<compile_context>
chip_gen: v7x
topology: tpu7x:2x2x1
jax: 0.10.0
libtpu: 0.0.40
codegen_flags: <defaults>
</compile_context>

<pallas_src>
import math

import jax
import jax.numpy as jnp
from jax.experimental import pallas as pl
from jax.experimental.pallas import tpu as pltpu

_VMEM_LIMIT_BYTES = 64 * 1024 * 1024  # safe on v5e/v6e (128 MiB) and v7x (64 MiB)


def _pick_tile(dim, target):
    """Largest-friendly tile: `target` if it divides `dim`, else the full dim."""
    return target if (dim >= target and dim % target == 0) else dim


# ---------------------------------------------------------------------------
# Tiled linear:  y = x @ w + b   (bf16 MXU inputs, f32 accumulation)
# ---------------------------------------------------------------------------

def _linear_kernel(x_ref, w_ref, b_ref, o_ref, acc_ref):
    kk = pl.program_id(2)

    @pl.when(kk == 0)
    def _init():
        acc_ref[...] = jnp.zeros_like(acc_ref)

    acc_ref[...] += jnp.dot(x_ref[...], w_ref[...],
                            preferred_element_type=jnp.float32)

    @pl.when(kk == pl.num_programs(2) - 1)
    def _store():
        o_ref[...] = (acc_ref[...] + b_ref[...]).astype(o_ref.dtype)


def linear_pallas(x, w, b, *, out_dtype=jnp.float32, tm=256, tn=256, tk=512):
    """x:[M,K], w:[K,N], b:[N]  ->  [M,N]  (tiled, pipelined, bf16 matmul / f32 acc)."""
    M, K = x.shape
    N = w.shape[1]
    tm = _pick_tile(M, tm)
    tn = _pick_tile(N, tn)
    tk = _pick_tile(K, tk)

    x = x.astype(jnp.bfloat16)
    w = w.astype(jnp.bfloat16)
    b2 = b.reshape(1, N).astype(jnp.float32)

    return pl.pallas_call(
        _linear_kernel,
        out_shape=jax.ShapeDtypeStruct((M, N), out_dtype),
        grid=(M // tm, N // tn, K // tk),
        in_specs=[
            pl.BlockSpec((tm, tk), lambda i, j, k: (i, k)),
            pl.BlockSpec((tk, tn), lambda i, j, k: (k, j)),
            pl.BlockSpec((1, tn), lambda i, j, k: (0, j)),
        ],
        out_specs=pl.BlockSpec((tm, tn), lambda i, j, k: (i, j)),
        scratch_shapes=[pltpu.VMEM((tm, tn), jnp.float32)],
        compiler_params=pltpu.CompilerParams(
            dimension_semantics=("parallel", "parallel", "arbitrary"),
            vmem_limit_bytes=_VMEM_LIMIT_BYTES),
    )(x, w, b2)


# ---------------------------------------------------------------------------
# Flash-style masked attention (all heads per grid step, KV-tiled)
# ---------------------------------------------------------------------------

def _make_attn_kernel(num_heads, head_dim):
    def _attn_kernel(q_ref, k_ref, v_ref, m_ref, o_ref, m_scr, l_scr, acc_scr):
        # q_ref: (1, n, tq, hn) bf16 (already scaled by 1/sqrt(hn))
        # k_ref/v_ref: (1, n, tk, hn) bf16
        # m_ref: (1, tq, tk) sparsity pattern (nonzero = attend; shared across heads)
        # o_ref: (1, tq, n*hn)     -- lane-dense output slab
        # scratch: m_scr/l_scr (n, tq, 1) f32, acc_scr (n, tq, hn) f32
        kv = pl.program_id(2)

        @pl.when(kv == 0)
        def _init():
            m_scr[...] = jnp.full_like(m_scr, -1e30)   # finite: avoids inf-inf NaN
            l_scr[...] = jnp.zeros_like(l_scr)
            acc_scr[...] = jnp.zeros_like(acc_scr)

        valid = (m_ref[0] != 0)                        # (tq, tk) bool
        # Skip the whole update when this (q, kv) tile is fully masked: under
        # online softmax an all-zero tile leaves m/l/acc unchanged, so this is
        # exactly equivalent and saves both MXU matmuls for sparse patterns.
        tile_nnz = jnp.max(valid.astype(jnp.float32))  # scalar, XLU reduce

        @pl.when(tile_nnz > 0.5)
        def _update():
            q = q_ref[0]                               # (n, tq, hn)
            k = k_ref[0]                               # (n, tk, hn)
            v = v_ref[0]                               # (n, tk, hn)
            valid_b = valid[None, :, :]                # (1, tq, tk)

            # Q.K^T without materializing K^T (batched over heads); f32 accumulation.
            s = jnp.einsum("hqd,hkd->hqk", q, k,
                           preferred_element_type=jnp.float32)      # (n, tq, tk)
            s = jnp.where(valid_b, s, -1e30)

            m_prev = m_scr[...]
            m_new = jnp.maximum(m_prev, jnp.max(s, axis=-1, keepdims=True))
            alpha = jnp.exp(m_prev - m_new)
            # CSR-softmax semantics: masked-out positions contribute exactly 0.
            p = jnp.where(valid_b, jnp.exp(s - m_new), 0.0)          # (n, tq, tk) f32

            l_scr[...] = alpha * l_scr[...] + jnp.sum(p, axis=-1, keepdims=True)
            acc_scr[...] = alpha * acc_scr[...] + jnp.einsum(
                "hqk,hkd->hqd", p.astype(v.dtype), v,
                preferred_element_type=jnp.float32)
            m_scr[...] = m_new

        @pl.when(kv == pl.num_programs(2) - 1)
        def _finalize():
            l = l_scr[...]                             # (n, tq, 1)
            # all-masked rows: l == 0 -> output 0 (matches empty CSR row)
            inv = jnp.where(l > 0.0, pl.reciprocal(l, approx=True), 0.0)
            ctx = (acc_scr[...] * inv).astype(o_ref.dtype)           # (n, tq, hn)
            for h_idx in range(num_heads):             # static unroll over heads
                o_ref[0, :, h_idx * head_dim:(h_idx + 1) * head_dim] = ctx[h_idx]

    return _attn_kernel


def sparse_core_attention_pallas(q, k, v, mask, *, tq=128, tkv=256):
    """q,k,v:[b,n,s,hn] bf16 (q pre-scaled); mask:[b,s,s] (nonzero=attend) -> [b,s,n*hn] bf16."""
    b, n, s, hn = q.shape
    h = n * hn
    tq = _pick_tile(s, tq)
    tkv = _pick_tile(s, tkv)

    q_spec = pl.BlockSpec((1, n, tq, hn), lambda bi, qi, ki: (bi, 0, qi, 0))
    kv_spec = pl.BlockSpec((1, n, tkv, hn), lambda bi, qi, ki: (bi, 0, ki, 0))
    mask_spec = pl.BlockSpec((1, tq, tkv), lambda bi, qi, ki: (bi, qi, ki))
    out_spec = pl.BlockSpec((1, tq, h), lambda bi, qi, ki: (bi, qi, 0))

    return pl.pallas_call(
        _make_attn_kernel(n, hn),
        out_shape=jax.ShapeDtypeStruct((b, s, h), jnp.bfloat16),
        grid=(b, s // tq, s // tkv),
        in_specs=[q_spec, kv_spec, kv_spec, mask_spec],
        out_specs=out_spec,
        scratch_shapes=[
            pltpu.VMEM((n, tq, 1), jnp.float32),   # running max
            pltpu.VMEM((n, tq, 1), jnp.float32),   # running sum
            pltpu.VMEM((n, tq, hn), jnp.float32),  # running context accumulator
        ],
        compiler_params=pltpu.CompilerParams(
            dimension_semantics=("parallel", "parallel", "arbitrary"),
            vmem_limit_bytes=_VMEM_LIMIT_BYTES),
    )(q, k, v, mask)


# ---------------------------------------------------------------------------
# Full module forward
# ---------------------------------------------------------------------------

def sparse_attention_forward(hidden_states, attention_mask, params, num_heads):
    """
    hidden_states : [s, b, h]  float32
    attention_mask: [b, 1, s, s]  (nonzero = attend)
    returns       : [s, b, h]  float32
    """
    s, b, h = hidden_states.shape
    hn = h // num_heads
    scale = 1.0 / math.sqrt(hn)

    # Linear layers are row-order agnostic: flatten [s, b, h] -> [s*b, h] as a
    # free view instead of materialising the reference's [b, s, h] permute.
    x = hidden_states.reshape(s * b, h)

    # fused QKV projection (tiled Pallas matmul) -> bf16 activations
    qkv = linear_pallas(x, params["w_qkv"], params["b_qkv"],
                        out_dtype=jnp.bfloat16)                    # [s*b, 3h]
    qkv = qkv.reshape(s, b, num_heads, 3, hn)

    # TODO(synk): fold these per-head slices + transposes into the attention
    # BlockSpec index_maps to avoid materialising q/k/v in HBM.
    q = jnp.transpose(qkv[:, :, :, 0, :], (1, 2, 0, 3))            # [b, n, s, hn]
    k = jnp.transpose(qkv[:, :, :, 1, :], (1, 2, 0, 3))
    v = jnp.transpose(qkv[:, :, :, 2, :], (1, 2, 0, 3))
    # fold 1/sqrt(hn) into q (s*hn elems instead of scaling s*s scores)
    q = (q * scale).astype(jnp.bfloat16)

    # per-batch sparsity pattern, shared across heads (free reshape; read directly
    # by the kernel -- no host conversion pass)
    mask3 = attention_mask.reshape(b, s, s)

    # flash-style masked attention; kernel writes a lane-dense [b, s, h] slab,
    # already in the "concat heads" layout the dense projection consumes.
    ctx = sparse_core_attention_pallas(q, k, v, mask3)             # [b, s, h] bf16

    # Transpose to sequence-major on the bf16 context (half the bytes of
    # transposing the f32 dense output), then the final reshape is free.
    ctx = jnp.transpose(ctx, (1, 0, 2)).reshape(s * b, h)          # [s*b, h] bf16
    out = linear_pallas(ctx, params["w_dense"], params["b_dense"],
                        out_dtype=jnp.float32)                     # [s*b, h]
    return out.reshape(s, b, h)                                    # [s, b, h]


# ---------------------------------------------------------------------------
# Deterministic parameter init + example run
# ---------------------------------------------------------------------------

def init_params(key, hidden_size):
    k1, k2, k3, k4 = jax.random.split(key, 4)
    scale = 1.0 / math.sqrt(hidden_size)
    return {
        # stored as [in, out] so y = x @ w + b  (== PyTorch x @ W.T + b)
        "w_qkv": jax.random.uniform(k1, (hidden_size, 3 * hidden_size),
                                    jnp.float32, -scale, scale),
        "b_qkv": jax.random.uniform(k2, (3 * hidden_size,),
                                    jnp.float32, -scale, scale),
        "w_dense": jax.random.uniform(k3, (hidden_size, hidden_size),
                                      jnp.float32, -scale, scale),
        "b_dense": jax.random.uniform(k4, (hidden_size,),
                                      jnp.float32, -scale, scale),
    }


if __name__ == "__main__":
    seq_length = 8
    batch = 2
    hidden_size = 32
    num_heads = 4

    root = jax.random.PRNGKey(0)
    k_params, k_x = jax.random.split(root)

    params = init_params(k_params, hidden_size)
    hidden_states = jax.random.normal(k_x, (seq_length, batch, hidden_size),
                                      jnp.float32)

    # Causal (lower-triangular) binary mask (every row has >= 1 nonzero; the
    # kernel also guards all-zero rows by emitting 0, matching empty CSR rows).
    causal = jnp.tril(jnp.ones((seq_length, seq_length), jnp.float32))
    attention_mask = jnp.broadcast_to(
        causal[None, None, :, :], (batch, 1, seq_length, seq_length)
    )

    fwd = jax.jit(
        lambda hs, m: sparse_attention_forward(hs, m, params, num_heads)
    )
    out = fwd(hidden_states, attention_mask)
    jax.block_until_ready(out)

    assert out.shape == (seq_length, batch, hidden_size)
    assert bool(jnp.all(jnp.isfinite(out)))
    print("KERNEL_OK")
</pallas_src>

<mosaic_0001>
module attributes {stable_mosaic.version = 11 : i64} {
  func.func @_linear_kernel(%arg0: i32, %arg1: i32, %arg2: i32, %arg3: memref<16x32xbf16, #tpu.memory_space<vmem>>, %arg4: memref<32x96xbf16, #tpu.memory_space<vmem>>, %arg5: memref<1x96xf32, #tpu.memory_space<vmem>>, %arg6: memref<16x96xbf16, #tpu.memory_space<vmem>>, %arg7: memref<16x96xf32, #tpu.memory_space<vmem>>) attributes {dimension_semantics = [#tpu.dimension_semantics<parallel>, #tpu.dimension_semantics<parallel>, #tpu.dimension_semantics<arbitrary>], iteration_bounds = array<i64: 1, 1, 1>, scalar_prefetch = 0 : i64, scratch_operands = 1 : i64, tpu.core_type = #tpu.core_type<tc>, window_params = [{transform_indices = @transform_0, window_bounds = array<i64: 16, 32>}, {transform_indices = @transform_1, window_bounds = array<i64: 32, 96>}, {transform_indices = @transform_2, window_bounds = array<i64: 1, 96>}, {transform_indices = @transform_3, window_bounds = array<i64: 16, 96>}]} {
    %c0_i32 = arith.constant 0 : i32
    %0 = arith.cmpi eq, %arg2, %c0_i32 : i32
    %1 = arith.extui %0 : i1 to i32
    %c0_i32_0 = arith.constant 0 : i32
    %2 = arith.cmpi ne, %1, %c0_i32_0 : i32
    scf.if %2 {
      %cst_10 = arith.constant 0.000000e+00 : f32
      %12 = vector.broadcast %cst_10 : f32 to vector<16x96xf32>
      %c0_11 = arith.constant 0 : index
      %c0_12 = arith.constant 0 : index
      %13 = vector.load %arg7[%c0_11, %c0_12] : memref<16x96xf32, #tpu.memory_space<vmem>>, vector<16x96xf32>
      tpu.vector_store %arg7[%c0_11, %c0_12], %12 {strides = array<i32>} : memref<16x96xf32, #tpu.memory_space<vmem>>, vector<16x96xf32>,
    } else {
    }
    %c0 = arith.constant 0 : index
    %c0_1 = arith.constant 0 : index
    %3 = vector.load %arg7[%c0, %c0_1] : memref<16x96xf32, #tpu.memory_space<vmem>>, vector<16x96xf32>
    %c0_2 = arith.constant 0 : index
    %c0_3 = arith.constant 0 : index
    %4 = vector.load %arg3[%c0_2, %c0_3] : memref<16x32xbf16, #tpu.memory_space<vmem>>, vector<16x32xbf16>
    %c0_4 = arith.constant 0 : index
    %c0_5 = arith.constant 0 : index
    %5 = vector.load %arg4[%c0_4, %c0_5] : memref<32x96xbf16, #tpu.memory_space<vmem>>, vector<32x96xbf16>
    %cst = arith.constant dense<0.000000e+00> : vector<16x96xf32>
    %6 = tpu.matmul %4, %5, %cst {dimension_numbers = #tpu.dot_dimension_numbers<[1], [0], [0], [1], [0, 0, 1, 1], [], []>} : vector<16x32xbf16>, vector<32x96xbf16>, vector<16x96xf32> -> vector<16x96xf32>
    %7 = arith.addf %3, %6 : vector<16x96xf32>
    %c0_6 = arith.constant 0 : index
    %c0_7 = arith.constant 0 : index
    %8 = vector.load %arg7[%c0_6, %c0_7] : memref<16x96xf32, #tpu.memory_space<vmem>>, vector<16x96xf32>
    tpu.vector_store %arg7[%c0_6, %c0_7], %7 {strides = array<i32>} : memref<16x96xf32, #tpu.memory_space<vmem>>, vector<16x96xf32>,
    %c0_i32_8 = arith.constant 0 : i32
    %9 = arith.cmpi eq, %arg2, %c0_i32_8 : i32
    %10 = arith.extui %9 : i1 to i32
    %c0_i32_9 = arith.constant 0 : i32
    %11 = arith.cmpi ne, %10, %c0_i32_9 : i32
    scf.if %11 {
      %c0_10 = arith.constant 0 : index
      %c0_11 = arith.constant 0 : index
      %12 = vector.load %arg7[%c0_10, %c0_11] : memref<16x96xf32, #tpu.memory_space<vmem>>, vector<16x96xf32>
      %c0_12 = arith.constant 0 : index
      %c0_13 = arith.constant 0 : index
      %13 = vector.load %arg5[%c0_12, %c0_13] : memref<1x96xf32, #tpu.memory_space<vmem>>, vector<1x96xf32>
      %14 = vector.broadcast %13 : vector<1x96xf32> to vector<16x96xf32>
      %15 = arith.addf %12, %14 : vector<16x96xf32>
      %16 = arith.truncf %15 : vector<16x96xf32> to vector<16x96xbf16>
      %c0_14 = arith.constant 0 : index
      %c0_15 = arith.constant 0 : index
      %17 = vector.load %arg6[%c0_14, %c0_15] : memref<16x96xbf16, #tpu.memory_space<vmem>>, vector<16x96xbf16>
      tpu.vector_store %arg6[%c0_14, %c0_15], %16 {strides = array<i32>} : memref<16x96xbf16, #tpu.memory_space<vmem>>, vector<16x96xbf16>,
    } else {
    }
    return
  }
  func.func @transform_0(%arg0: i32, %arg1: i32, %arg2: i32) -> (i32, i32) {
    %c0_i32 = arith.constant 0 : i32
    return %arg0, %arg2 : i32, i32
  }
  func.func @transform_1(%arg0: i32, %arg1: i32, %arg2: i32) -> (i32, i32) {
    %c0_i32 = arith.constant 0 : i32
    return %arg2, %arg1 : i32, i32
  }
  func.func @transform_2(%arg0: i32, %arg1: i32, %arg2: i32) -> (i32, i32) {
    %c0_i32 = arith.constant 0 : i32
    %c0_i32_0 = arith.constant 0 : i32
    return %c0_i32, %arg1 : i32, i32
  }
  func.func @transform_3(%arg0: i32, %arg1: i32, %arg2: i32) -> (i32, i32) {
    %c0_i32 = arith.constant 0 : i32
    return %arg0, %arg1 : i32, i32
  }
}

module attributes {stable_mosaic.version = 11 : i64} {
  func.func @_attn_kernel(%arg0: i32, %arg1: i32, %arg2: i32, %arg3: memref<1x4x8x8xbf16, #tpu.memory_space<vmem>>, %arg4: memref<1x4x8x8xbf16, #tpu.memory_space<vmem>>, %arg5: memref<1x4x8x8xbf16, #tpu.memory_space<vmem>>, %arg6: memref<1x8x8xf32, #tpu.memory_space<vmem>>, %arg7: memref<1x8x32xbf16, #tpu.memory_space<vmem>>, %arg8: memref<4x8x1xf32, #tpu.memory_space<vmem>>, %arg9: memref<4x8x1xf32, #tpu.memory_space<vmem>>, %arg10: memref<4x8x8xf32, #tpu.memory_space<vmem>>) attributes {dimension_semantics = [#tpu.dimension_semantics<parallel>, #tpu.dimension_semantics<parallel>, #tpu.dimension_semantics<arbitrary>], iteration_bounds = array<i64: 2, 1, 1>, scalar_prefetch = 0 : i64, scratch_operands = 3 : i64, tpu.core_type = #tpu.core_type<tc>, window_params = [{transform_indices = @transform_0, window_bounds = array<i64: 1, 4, 8, 8>}, {transform_indices = @transform_1, window_bounds = array<i64: 1, 4, 8, 8>}, {transform_indices = @transform_2, window_bounds = array<i64: 1, 4, 8, 8>}, {transform_indices = @transform_3, window_bounds = array<i64: 1, 8, 8>}, {transform_indices = @transform_4, window_bounds = array<i64: 1, 8, 32>}]} {
    %c0_i32 = arith.constant 0 : i32
    %0 = arith.cmpi eq, %arg2, %c0_i32 : i32
    %1 = arith.extui %0 : i1 to i32
    %c0_i32_0 = arith.constant 0 : i32
    %2 = arith.cmpi ne, %1, %c0_i32_0 : i32
    scf.if %2 {
      %cst_8 = arith.constant -1.000000e+30 : f32
      %19 = vector.broadcast %cst_8 : f32 to vector<4x8x1xf32>
      %c0_9 = arith.constant 0 : index
      %c0_10 = arith.constant 0 : index
      %c0_11 = arith.constant 0 : index
      %20 = vector.load %arg8[%c0_9, %c0_10, %c0_11] : memref<4x8x1xf32, #tpu.memory_space<vmem>>, vector<4x8x1xf32>
      tpu.vector_store %arg8[%c0_9, %c0_10, %c0_11], %19 {strides = array<i32>} : memref<4x8x1xf32, #tpu.memory_space<vmem>>, vector<4x8x1xf32>,
      %cst_12 = arith.constant 0.000000e+00 : f32
      %21 = vector.broadcast %cst_12 : f32 to vector<4x8x1xf32>
      %c0_13 = arith.constant 0 : index
      %c0_14 = arith.constant 0 : index
      %c0_15 = arith.constant 0 : index
      %22 = vector.load %arg9[%c0_13, %c0_14, %c0_15] : memref<4x8x1xf32, #tpu.memory_space<vmem>>, vector<4x8x1xf32>
      tpu.vector_store %arg9[%c0_13, %c0_14, %c0_15], %21 {strides = array<i32>} : memref<4x8x1xf32, #tpu.memory_space<vmem>>, vector<4x8x1xf32>,
      %cst_16 = arith.constant 0.000000e+00 : f32
      %23 = vector.broadcast %cst_16 : f32 to vector<4x8x8xf32>
      %c0_17 = arith.constant 0 : index
      %c0_18 = arith.constant 0 : index
      %c0_19 = arith.constant 0 : index
      %24 = vector.load %arg10[%c0_17, %c0_18, %c0_19] : memref<4x8x8xf32, #tpu.memory_space<vmem>>, vector<4x8x8xf32>
      tpu.vector_store %arg10[%c0_17, %c0_18, %c0_19], %23 {strides = array<i32>} : memref<4x8x8xf32, #tpu.memory_space<vmem>>, vector<4x8x8xf32>,
    } else {
    }
    %c0 = arith.constant 0 : index
    %c0_1 = arith.constant 0 : index
    %c0_2 = arith.constant 0 : index
    %3 = vector.load %arg6[%c0, %c0_1, %c0_2] : memref<1x8x8xf32, #tpu.memory_space<vmem>>, vector<1x8x8xf32>
    %4 = vector.shape_cast %3 : vector<1x8x8xf32> to vector<8x8xf32>
    %cst = arith.constant 0.000000e+00 : f32
    %5 = vector.broadcast %cst : f32 to vector<8x8xf32>
    %6 = arith.cmpf one, %4, %5 : vector<8x8xf32>
    %7 = arith.extui %6 : vector<8x8xi1> to vector<8x8xi32>
    %8 = arith.sitofp %7 : vector<8x8xi32> to vector<8x8xf32>
    %9 = vector.shape_cast %8 : vector<8x8xf32> to vector<1x8x8xf32>
    %cst_3 = arith.constant dense<0xFF800000> : vector<1xf32>
    %10 = vector.multi_reduction <maximumf>, %9, %cst_3 [1, 2] : vector<1x8x8xf32> to vector<1xf32>
    %11 = vector.shape_cast %10 : vector<1xf32> to vector<1x1x1xf32>
    %12 = vector.extract %11[0, 0, 0] : f32 from vector<1x1x1xf32>
    %cst_4 = arith.constant 5.000000e-01 : f32
    %13 = arith.cmpf ogt, %12, %cst_4 : f32
    %14 = arith.extui %13 : i1 to i32
    %c0_i32_5 = arith.constant 0 : i32
    %15 = arith.cmpi ne, %14, %c0_i32_5 : i32
    scf.if %15 {
      %c0_8 = arith.constant 0 : index
      %c0_9 = arith.constant 0 : index
      %c0_10 = arith.constant 0 : index
      %c0_11 = arith.constant 0 : index
      %19 = vector.load %arg3[%c0_8, %c0_9, %c0_10, %c0_11] : memref<1x4x8x8xbf16, #tpu.memory_space<vmem>>, vector<1x4x8x8xbf16>
      %20 = vector.shape_cast %19 : vector<1x4x8x8xbf16> to vector<4x8x8xbf16>
      %c0_12 = arith.constant 0 : index
      %c0_13 = arith.constant 0 : index
      %c0_14 = arith.constant 0 : index
      %c0_15 = arith.constant 0 : index
      %21 = vector.load %arg4[%c0_12, %c0_13, %c0_14, %c0_15] : memref<1x4x8x8xbf16, #tpu.memory_space<vmem>>, vector<1x4x8x8xbf16>
      %22 = vector.shape_cast %21 : vector<1x4x8x8xbf16> to vector<4x8x8xbf16>
      %c0_16 = arith.constant 0 : index
      %c0_17 = arith.constant 0 : index
      %c0_18 = arith.constant 0 : index
      %c0_19 = arith.constant 0 : index
      %23 = vector.load %arg5[%c0_16, %c0_17, %c0_18, %c0_19] : memref<1x4x8x8xbf16, #tpu.memory_space<vmem>>, vector<1x4x8x8xbf16>
      %24 = vector.shape_cast %23 : vector<1x4x8x8xbf16> to vector<4x8x8xbf16>
      %25 = vector.shape_cast %6 : vector<8x8xi1> to vector<1x8x8xi1>
      "tpu.trace_start"() <{level = 10 : i32, message = "hqd,hkd->hqk"}> : () -> ()
      %cst_20 = arith.constant dense<0.000000e+00> : vector<4x8x8xf32>
      %26 = tpu.matmul %20, %22, %cst_20 {dimension_numbers = #tpu.dot_dimension_numbers<[2], [2], [1], [1], [0, 0, 0, 1, 1, 1], [0], [0]>} : vector<4x8x8xbf16>, vector<4x8x8xbf16>, vector<4x8x8xf32> -> vector<4x8x8xf32>
      %cst_21 = arith.constant -1.000000e+30 : f32
      "tpu.trace_stop"() : () -> ()
      %27 = vector.shape_cast %25 : vector<1x8x8xi1> to vector<1x8x8xi1>
      %28 = vector.broadcast %27 : vector<1x8x8xi1> to vector<4x8x8xi1>
      %29 = vector.broadcast %cst_21 : f32 to vector<4x8x8xf32>
      %30 = arith.select %28, %26, %29 : vector<4x8x8xi1>, vector<4x8x8xf32>
      %c0_22 = arith.constant 0 : index
      %c0_23 = arith.constant 0 : index
      %c0_24 = arith.constant 0 : index
      %31 = vector.load %arg8[%c0_22, %c0_23, %c0_24] : memref<4x8x1xf32, #tpu.memory_space<vmem>>, vector<4x8x1xf32>
      %cst_25 = arith.constant dense<0xFF800000> : vector<4x8xf32>
      %32 = vector.multi_reduction <maximumf>, %30, %cst_25 [2] : vector<4x8x8xf32> to vector<4x8xf32>
      %33 = vector.shape_cast %32 : vector<4x8xf32> to vector<4x8x1xf32>
      %34 = arith.maximumf %31, %33 : vector<4x8x1xf32>
      %35 = arith.subf %31, %34 : vector<4x8x1xf32>
      %36 = math.exp %35 : vector<4x8x1xf32>
      %37 = vector.broadcast %34 : vector<4x8x1xf32> to vector<4x8x8xf32>
      %38 = arith.subf %30, %37 : vector<4x8x8xf32>
      %39 = math.exp %38 : vector<4x8x8xf32>
      %cst_26 = arith.constant 0.000000e+00 : f32
      %40 = vector.shape_cast %25 : vector<1x8x8xi1> to vector<1x8x8xi1>
      %41 = vector.broadcast %40 : vector<1x8x8xi1> to vector<4x8x8xi1>
      %42 = vector.broadcast %cst_26 : f32 to vector<4x8x8xf32>
      %43 = arith.select %41, %39, %42 : vector<4x8x8xi1>, vector<4x8x8xf32>
      %c0_27 = arith.constant 0 : index
      %c0_28 = arith.constant 0 : index
      %c0_29 = arith.constant 0 : index
      %44 = vector.load %arg9[%c0_27, %c0_28, %c0_29] : memref<4x8x1xf32, #tpu.memory_space<vmem>>, vector<4x8x1xf32>
      %45 = arith.mulf %36, %44 : vector<4x8x1xf32>
      %cst_30 = arith.constant dense<0.000000e+00> : vector<4x8xf32>
      %46 = vector.multi_reduction <add>, %43, %cst_30 [2] : vector<4x8x8xf32> to vector<4x8xf32>
      %47 = vector.shape_cast %46 : vector<4x8xf32> to vector<4x8x1xf32>
      %48 = arith.addf %45, %47 : vector<4x8x1xf32>
      %c0_31 = arith.constant 0 : index
      %c0_32 = arith.constant 0 : index
      %c0_33 = arith.constant 0 : index
      %49 = vector.load %arg9[%c0_31, %c0_32, %c0_33] : memref<4x8x1xf32, #tpu.memory_space<vmem>>, vector<4x8x1xf32>
      tpu.vector_store %arg9[%c0_31, %c0_32, %c0_33], %48 {strides = array<i32>} : memref<4x8x1xf32, #tpu.memory_space<vmem>>, vector<4x8x1xf32>,
      %c0_34 = arith.constant 0 : index
      %c0_35 = arith.constant 0 : index
      %c0_36 = arith.constant 0 : index
      %50 = vector.load %arg10[%c0_34, %c0_35, %c0_36] : memref<4x8x8xf32, #tpu.memory_space<vmem>>, vector<4x8x8xf32>
      %51 = vector.broadcast %36 : vector<4x8x1xf32> to vector<4x8x8xf32>
      %52 = arith.mulf %51, %50 : vector<4x8x8xf32>
      %53 = arith.truncf %43 : vector<4x8x8xf32> to vector<4x8x8xbf16>
      "tpu.trace_start"() <{level = 10 : i32, message = "hqk,hkd->hqd"}> : () -> ()
      %cst_37 = arith.constant dense<0.000000e+00> : vector<4x8x8xf32>
      %54 = tpu.matmul %53, %24, %cst_37 {dimension_numbers = #tpu.dot_dimension_numbers<[2], [1], [1], [2], [0, 0, 0, 1, 1, 2], [0], [0]>} : vector<4x8x8xbf16>, vector<4x8x8xbf16>, vector<4x8x8xf32> -> vector<4x8x8xf32>
      "tpu.trace_stop"() : () -> ()
      %55 = arith.addf %52, %54 : vector<4x8x8xf32>
      %c0_38 = arith.constant 0 : index
      %c0_39 = arith.constant 0 : index
      %c0_40 = arith.constant 0 : index
      %56 = vector.load %arg10[%c0_38, %c0_39, %c0_40] : memref<4x8x8xf32, #tpu.memory_space<vmem>>, vector<4x8x8xf32>
      tpu.vector_store %arg10[%c0_38, %c0_39, %c0_40], %55 {strides = array<i32>} : memref<4x8x8xf32, #tpu.memory_space<vmem>>, vector<4x8x8xf32>,
      %c0_41 = arith.constant 0 : index
      %c0_42 = arith.constant 0 : index
      %c0_43 = arith.constant 0 : index
      %57 = vector.load %arg8[%c0_41, %c0_42, %c0_43] : memref<4x8x1xf32, #tpu.memory_space<vmem>>, vector<4x8x1xf32>
      tpu.vector_store %arg8[%c0_41, %c0_42, %c0_43], %34 {strides = array<i32>} : memref<4x8x1xf32, #tpu.memory_space<vmem>>, vector<4x8x1xf32>,
    } else {
    }
    %c0_i32_6 = arith.constant 0 : i32
    %16 = arith.cmpi eq, %arg2, %c0_i32_6 : i32
    %17 = arith.extui %16 : i1 to i32
    %c0_i32_7 = arith.constant 0 : i32
    %18 = arith.cmpi ne, %17, %c0_i32_7 : i32
    scf.if %18 {
      %c0_8 = arith.constant 0 : index
      %c0_9 = arith.constant 0 : index
      %c0_10 = arith.constant 0 : index
      %19 = vector.load %arg9[%c0_8, %c0_9, %c0_10] : memref<4x8x1xf32, #tpu.memory_space<vmem>>, vector<4x8x1xf32>
      %cst_11 = arith.constant 0.000000e+00 : f32
      %20 = vector.broadcast %cst_11 : f32 to vector<4x8x1xf32>
      %21 = arith.cmpf ogt, %19, %20 : vector<4x8x1xf32>
      %22 = tpu.reciprocal %19 {approx = true} : vector<4x8x1xf32> -> vector<4x8x1xf32>
      %cst_12 = arith.constant 0.000000e+00 : f32
      %23 = vector.broadcast %cst_12 : f32 to vector<4x8x1xf32>
      %24 = arith.select %21, %22, %23 : vector<4x8x1xi1>, vector<4x8x1xf32>
      %c0_13 = arith.constant 0 : index
      %c0_14 = arith.constant 0 : index
      %c0_15 = arith.constant 0 : index
      %25 = vector.load %arg10[%c0_13, %c0_14, %c0_15] : memref<4x8x8xf32, #tpu.memory_space<vmem>>, vector<4x8x8xf32>
      %26 = vector.broadcast %24 : vector<4x8x1xf32> to vector<4x8x8xf32>
      %27 = arith.mulf %25, %26 : vector<4x8x8xf32>
      %28 = arith.truncf %27 : vector<4x8x8xf32> to vector<4x8x8xbf16>
      %29 = vector.extract_strided_slice %28 {offsets = [0, 0, 0], sizes = [1, 8, 8], strides = [1, 1, 1]} : vector<4x8x8xbf16> to vector<1x8x8xbf16>
      %30 = vector.shape_cast %29 : vector<1x8x8xbf16> to vector<8x8xbf16>
      %c0_16 = arith.constant 0 : index
      %c0_17 = arith.constant 0 : index
      %c0_18 = arith.constant 0 : index
      %31 = vector.load %arg7[%c0_16, %c0_17, %c0_18] : memref<1x8x32xbf16, #tpu.memory_space<vmem>>, vector<1x8x8xbf16>
      %32 = vector.shape_cast %31 : vector<1x8x8xbf16> to vector<8x8xbf16>
      %33 = vector.shape_cast %30 : vector<8x8xbf16> to vector<1x8x8xbf16>
      tpu.vector_store %arg7[%c0_16, %c0_17, %c0_18], %33 {strides = array<i32>} : memref<1x8x32xbf16, #tpu.memory_space<vmem>>, vector<1x8x8xbf16>,
      %34 = vector.extract_strided_slice %28 {offsets = [1, 0, 0], sizes = [1, 8, 8], strides = [1, 1, 1]} : vector<4x8x8xbf16> to vector<1x8x8xbf16>
      %35 = vector.shape_cast %34 : vector<1x8x8xbf16> to vector<8x8xbf16>
      %c0_19 = arith.constant 0 : index
      %c0_20 = arith.constant 0 : index
      %c8 = arith.constant 8 : index
      %36 = vector.load %arg7[%c0_19, %c0_20, %c8] : memref<1x8x32xbf16, #tpu.memory_space<vmem>>, vector<1x8x8xbf16>
      %37 = vector.shape_cast %36 : vector<1x8x8xbf16> to vector<8x8xbf16>
      %38 = vector.shape_cast %35 : vector<8x8xbf16> to vector<1x8x8xbf16>
      tpu.vector_store %arg7[%c0_19, %c0_20, %c8], %38 {strides = array<i32>} : memref<1x8x32xbf16, #tpu.memory_space<vmem>>, vector<1x8x8xbf16>,
      %39 = vector.extract_strided_slice %28 {offsets = [2, 0, 0], sizes = [1, 8, 8], strides = [1, 1, 1]} : vector<4x8x8xbf16> to vector<1x8x8xbf16>
      %40 = vector.shape_cast %39 : vector<1x8x8xbf16> to vector<8x8xbf16>
      %c0_21 = arith.constant 0 : index
      %c0_22 = arith.constant 0 : index
      %c16 = arith.constant 16 : index
      %41 = vector.load %arg7[%c0_21, %c0_22, %c16] : memref<1x8x32xbf16, #tpu.memory_space<vmem>>, vector<1x8x8xbf16>
      %42 = vector.shape_cast %41 : vector<1x8x8xbf16> to vector<8x8xbf16>
      %43 = vector.shape_cast %40 : vector<8x8xbf16> to vector<1x8x8xbf16>
      tpu.vector_store %arg7[%c0_21, %c0_22, %c16], %43 {strides = array<i32>} : memref<1x8x32xbf16, #tpu.memory_space<vmem>>, vector<1x8x8xbf16>,
      %44 = vector.extract_strided_slice %28 {offsets = [3, 0, 0], sizes = [1, 8, 8], strides = [1, 1, 1]} : vector<4x8x8xbf16> to vector<1x8x8xbf16>
      %45 = vector.shape_cast %44 : vector<1x8x8xbf16> to vector<8x8xbf16>
      %c0_23 = arith.constant 0 : index
      %c0_24 = arith.constant 0 : index
      %c24 = arith.constant 24 : index
      %46 = vector.load %arg7[%c0_23, %c0_24, %c24] : memref<1x8x32xbf16, #tpu.memory_space<vmem>>, vector<1x8x8xbf16>
      %47 = vector.shape_cast %46 : vector<1x8x8xbf16> to vector<8x8xbf16>
      %48 = vector.shape_cast %45 : vector<8x8xbf16> to vector<1x8x8xbf16>
      tpu.vector_store %arg7[%c0_23, %c0_24, %c24], %48 {strides = array<i32>} : memref<1x8x32xbf16, #tpu.memory_space<vmem>>, vector<1x8x8xbf16>,
    } else {
    }
    return
  }
  func.func @transform_0(%arg0: i32, %arg1: i32, %arg2: i32) -> (i32, i32, i32, i32) {
    %c0_i32 = arith.constant 0 : i32
    %c0_i32_0 = arith.constant 0 : i32
    %c0_i32_1 = arith.constant 0 : i32
    return %arg0, %c0_i32, %arg1, %c0_i32_0 : i32, i32, i32, i32
  }
  func.func @transform_1(%arg0: i32, %arg1: i32, %arg2: i32) -> (i32, i32, i32, i32) {
    %c0_i32 = arith.constant 0 : i32
    %c0_i32_0 = arith.constant 0 : i32
    %c0_i32_1 = arith.constant 0 : i32
    return %arg0, %c0_i32, %arg2, %c0_i32_0 : i32, i32, i32, i32
  }
  func.func @transform_2(%arg0: i32, %arg1: i32, %arg2: i32) -> (i32, i32, i32, i32) {
    %c0_i32 = arith.constant 0 : i32
    %c0_i32_0 = arith.constant 0 : i32
    %c0_i32_1 = arith.constant 0 : i32
    return %arg0, %c0_i32, %arg2, %c0_i32_0 : i32, i32, i32, i32
  }
  func.func @transform_3(%arg0: i32, %arg1: i32, %arg2: i32) -> (i32, i32, i32) {
    %c0_i32 = arith.constant 0 : i32
    return %arg0, %arg1, %arg2 : i32, i32, i32
  }
  func.func @transform_4(%arg0: i32, %arg1: i32, %arg2: i32) -> (i32, i32, i32) {
    %c0_i32 = arith.constant 0 : i32
    %c0_i32_0 = arith.constant 0 : i32
    return %arg0, %arg1, %c0_i32 : i32, i32, i32
  }
}

module attributes {stable_mosaic.version = 11 : i64} {
  func.func @_linear_kernel(%arg0: i32, %arg1: i32, %arg2: i32, %arg3: memref<16x32xbf16, #tpu.memory_space<vmem>>, %arg4: memref<32x32xbf16, #tpu.memory_space<vmem>>, %arg5: memref<1x32xf32, #tpu.memory_space<vmem>>, %arg6: memref<16x32xf32, #tpu.memory_space<vmem>>, %arg7: memref<16x32xf32, #tpu.memory_space<vmem>>) attributes {dimension_semantics = [#tpu.dimension_semantics<parallel>, #tpu.dimension_semantics<parallel>, #tpu.dimension_semantics<arbitrary>], iteration_bounds = array<i64: 1, 1, 1>, scalar_prefetch = 0 : i64, scratch_operands = 1 : i64, tpu.core_type = #tpu.core_type<tc>, window_params = [{transform_indices = @transform_0, window_bounds = array<i64: 16, 32>}, {transform_indices = @transform_1, window_bounds = array<i64: 32, 32>}, {transform_indices = @transform_2, window_bounds = array<i64: 1, 32>}, {transform_indices = @transform_3, window_bounds = array<i64: 16, 32>}]} {
    %c0_i32 = arith.constant 0 : i32
    %0 = arith.cmpi eq, %arg2, %c0_i32 : i32
    %1 = arith.extui %0 : i1 to i32
    %c0_i32_0 = arith.constant 0 : i32
    %2 = arith.cmpi ne, %1, %c0_i32_0 : i32
    scf.if %2 {
      %cst_10 = arith.constant 0.000000e+00 : f32
      %12 = vector.broadcast %cst_10 : f32 to vector<16x32xf32>
      %c0_11 = arith.constant 0 : index
      %c0_12 = arith.constant 0 : index
      %13 = vector.load %arg7[%c0_11, %c0_12] : memref<16x32xf32, #tpu.memory_space<vmem>>, vector<16x32xf32>
      tpu.vector_store %arg7[%c0_11, %c0_12], %12 {strides = array<i32>} : memref<16x32xf32, #tpu.memory_space<vmem>>, vector<16x32xf32>,
    } else {
    }
    %c0 = arith.constant 0 : index
    %c0_1 = arith.constant 0 : index
    %3 = vector.load %arg7[%c0, %c0_1] : memref<16x32xf32, #tpu.memory_space<vmem>>, vector<16x32xf32>
    %c0_2 = arith.constant 0 : index
    %c0_3 = arith.constant 0 : index
    %4 = vector.load %arg3[%c0_2, %c0_3] : memref<16x32xbf16, #tpu.memory_space<vmem>>, vector<16x32xbf16>
    %c0_4 = arith.constant 0 : index
    %c0_5 = arith.constant 0 : index
    %5 = vector.load %arg4[%c0_4, %c0_5] : memref<32x32xbf16, #tpu.memory_space<vmem>>, vector<32x32xbf16>
    %cst = arith.constant dense<0.000000e+00> : vector<16x32xf32>
    %6 = tpu.matmul %4, %5, %cst {dimension_numbers = #tpu.dot_dimension_numbers<[1], [0], [0], [1], [0, 0, 1, 1], [], []>} : vector<16x32xbf16>, vector<32x32xbf16>, vector<16x32xf32> -> vector<16x32xf32>
    %7 = arith.addf %3, %6 : vector<16x32xf32>
    %c0_6 = arith.constant 0 : index
    %c0_7 = arith.constant 0 : index
    %8 = vector.load %arg7[%c0_6, %c0_7] : memref<16x32xf32, #tpu.memory_space<vmem>>, vector<16x32xf32>
    tpu.vector_store %arg7[%c0_6, %c0_7], %7 {strides = array<i32>} : memref<16x32xf32, #tpu.memory_space<vmem>>, vector<16x32xf32>,
    %c0_i32_8 = arith.constant 0 : i32
    %9 = arith.cmpi eq, %arg2, %c0_i32_8 : i32
    %10 = arith.extui %9 : i1 to i32
    %c0_i32_9 = arith.constant 0 : i32
    %11 = arith.cmpi ne, %10, %c0_i32_9 : i32
    scf.if %11 {
      %c0_10 = arith.constant 0 : index
      %c0_11 = arith.constant 0 : index
      %12 = vector.load %arg7[%c0_10, %c0_11] : memref<16x32xf32, #tpu.memory_space<vmem>>, vector<16x32xf32>
      %c0_12 = arith.constant 0 : index
      %c0_13 = arith.constant 0 : index
      %13 = vector.load %arg5[%c0_12, %c0_13] : memref<1x32xf32, #tpu.memory_space<vmem>>, vector<1x32xf32>
      %14 = vector.broadcast %13 : vector<1x32xf32> to vector<16x32xf32>
      %15 = arith.addf %12, %14 : vector<16x32xf32>
      %c0_14 = arith.constant 0 : index
      %c0_15 = arith.constant 0 : index
      %16 = vector.load %arg6[%c0_14, %c0_15] : memref<16x32xf32, #tpu.memory_space<vmem>>, vector<16x32xf32>
      tpu.vector_store %arg6[%c0_14, %c0_15], %15 {strides = array<i32>} : memref<16x32xf32, #tpu.memory_space<vmem>>, vector<16x32xf32>,
    } else {
    }
    return
  }
  func.func @transform_0(%arg0: i32, %arg1: i32, %arg2: i32) -> (i32, i32) {
    %c0_i32 = arith.constant 0 : i32
    return %arg0, %arg2 : i32, i32
  }
  func.func @transform_1(%arg0: i32, %arg1: i32, %arg2: i32) -> (i32, i32) {
    %c0_i32 = arith.constant 0 : i32
    return %arg2, %arg1 : i32, i32
  }
  func.func @transform_2(%arg0: i32, %arg1: i32, %arg2: i32) -> (i32, i32) {
    %c0_i32 = arith.constant 0 : i32
    %c0_i32_0 = arith.constant 0 : i32
    return %c0_i32, %arg1 : i32, i32
  }
  func.func @transform_3(%arg0: i32, %arg1: i32, %arg2: i32) -> (i32, i32) {
    %c0_i32 = arith.constant 0 : i32
    return %arg0, %arg1 : i32, i32
  }
}

</mosaic_0001>

<bundles_post_ra>
// kernel: _lambda_.3
= control target key start
LH: loop header
LB: loop body
LE: loop exit
PB: predicated region body
PF: predicated region fallthrough
CT: control target
= control target key end

     0   :  { %8 = vsyncpa [#allocation4], 0  ;;  %s401_s0 = inlined_call_operand.hbm [shape: bf16[16,32], index: 0, kind: input, shape index: {}]   ;;  %s402_s1 = inlined_call_operand.hbm [shape: bf16[32,96], index: 1, kind: input, shape index: {}]   ;;  %s403_s2 = inlined_call_operand.hbm [shape: f32[1,96], index: 2, kind: input, shape index: {}]   ;;  %s404_s3 = inlined_call_operand.hbm [shape: bf16[16,96], index: 3, kind: output, shape index: {}]  }
   0x1   :  { %9 = vsyncpa [#allocation7], 0 }
   0x2   :  { %10 = vsyncpa [#allocation5], 0  ;;  %s305_s12 = smov [#allocation6]   ;;  %s306_s14 = smov [#allocation3]  }
   0x3   :  { %s28_s13 = sshll.u32 %s305_s12, 4  ;;  %s16_s15 = sshll.u32 %s306_s14, 4  ;;  %s29_s13 = int_to_ptr.vmem [resolvable:$true] %s28_s13  ;;  %s333_s15 = int_to_ptr.vmem [resolvable:$true] %s16_s15 }
   0x4   :  { %s211_s18 = scalar_lea.hbm %s402_s1, 256 }
   0x5   :  { %p212_p0 = scmp.ne.s32.totalorder %s402_s1, %s211_s18  ;;  %p215_p1 = scmp.lt.u32.totalorder %s211_s18, %s402_s1 }
   0x7   :  { %p217_p2 = pnand %p215_p1, %p212_p0 }
   0x9   :  { %220 = shalt.err (!%p217_p2)
}
   0xa   :  { %s221_s23 = scalar_lea.vmem %s29_s13, 256  ;;  %p226_p4 = scmp.lt.s32.totalorder %s29_s13, %s29_s13 }
   0xb   :  { %p222_p3 = scmp.ne.s32.totalorder %s29_s13, %s221_s23  ;;  %p227_p5 = scmp.lt.s32.totalorder %s221_s23, %s221_s23 }
   0xd   :  { %p228_p6 = por %p227_p5, %p226_p4 }
   0xf   :  { %p229_p7 = pnand %p228_p6, %p222_p3 }
  0x11   :  { %232 = shalt.err (!%p229_p7)
}
  0x12   :  { %s307_s24 = smov 64   ;;  %s308_s25 = smov 4  }
  0x13   :  { %34 = dma.hbm_to_vmem [thread:$0]  %s402_s1, 256, %s29_s13, [#allocation7], %s307_s24, %s307_s24, %s308_s25  }
  0x14   :  { %s233_s30 = scalar_lea.hbm %s401_s0, 128 }
  0x15   :  { %p234_p8 = scmp.ne.s32.totalorder %s401_s0, %s233_s30  ;;  %p237_p9 = scmp.lt.u32.totalorder %s233_s30, %s401_s0 }
  0x17   :  { %p239_p10 = pnand %p237_p9, %p234_p8 }
  0x19   :  { %242 = shalt.err (!%p239_p10)
}
  0x1a   :  { %s243_s8 = scalar_lea.vmem %s333_s15, 128  ;;  %p248_p12 = scmp.lt.s32.totalorder %s333_s15, %s333_s15 }
  0x1b   :  { %p244_p11 = scmp.ne.s32.totalorder %s333_s15, %s243_s8  ;;  %p249_p13 = scmp.lt.s32.totalorder %s243_s8, %s243_s8 }
  0x1d   :  { %p250_p0 = por %p249_p13, %p248_p12 }
  0x1f   :  { %p251_p1 = pnand %p250_p0, %p244_p11 }
  0x21   :  { %254 = shalt.err (!%p251_p1)
}
  0x22   :  { %22 = dma.hbm_to_vmem [thread:$0]  %s401_s0, 128, %s333_s15, [#allocation4], %s307_s24, %s307_s24, %s308_s25  }
  0x23   :  { %s309_s10 = smov [#allocation8]   ;;  %s255_s14 = scalar_lea.hbm %s403_s2, 16 }
  0x24   :  { %s41_s11 = sshll.u32 %s309_s10, 4  ;;  %p256_p2 = scmp.ne.s32.totalorder %s403_s2, %s255_s14  ;;  %s42_s11 = int_to_ptr.vmem [resolvable:$true] %s41_s11 }
  0x25   :  { %p259_p3 = scmp.lt.u32.totalorder %s255_s14, %s403_s2 }
  0x27   :  { %p261_p4 = pnand %p259_p3, %p256_p2 }
  0x29   :  { %264 = shalt.err (!%p261_p4)
}
  0x2a   :  { %s265_s20 = scalar_lea.vmem %s42_s11, 16  ;;  %s269_s0 = scalar_lea.vmem %s42_s11, 32 }
  0x2b   :  { %p266_p5 = scmp.ne.s32.totalorder %s42_s11, %s265_s20  ;;  %p270_p6 = scmp.lt.s32.totalorder %s42_s11, %s42_s11 }
  0x2c   :  { %p271_p7 = scmp.lt.s32.totalorder %s269_s0, %s265_s20 }
  0x2e   :  { %p272_p8 = por %p271_p7, %p270_p6 }
  0x30   :  { %p273_p9 = pnand %p272_p8, %p266_p5 }
  0x32   :  { %276 = shalt.err (!%p273_p9)
}
  0x33   :  { %44 = dma.hbm_to_vmem [thread:$0]  %s403_s2, 16, %s42_s11, [#allocation7]  }
  0x34   :  { %299 = dma.done.wait [#allocation4], 128  }
  0x35   :  { %300 = vsyncadd [#allocation4], 4294967168 }
  0x36   :  { %301 = dma.done.wait [#allocation7], 272  }
  0x37   :  { %302 = vsyncadd [#allocation7], 4294967024  ;;  %vm59_vm0 = vcmask 785408   ;;  %v310_v0 = vmov 0.0   ;;  %vm311_vm1 = vmmov 0   ;;  %v208_v1 = vld [vmem:[#allocation6] sm:$0xff]  }
  0x38   :  { %60 = vst.msk [vmem:[#allocation2] sm:$0xff] %vm59_vm0, %v310_v0  ;;  %61 = vst.msk [vmem:[#allocation2 + $0x8] sm:$0xff] %vm59_vm0, %v310_v0  ;;  %192 = vmatprep.subr.bf16.mxu0 %v310_v0  ;;  %196 = vmatprep.mubr.msk.bf16.mxu0 %vm311_vm1, %v310_v0  ;;  %v209_v2 = vld [vmem:[#allocation6 + $0x8] sm:$0xff]   ;;  %v210_v3 = vld [vmem:[#allocation3] sm:$0xff]   ;;  %vm87_vm2 = vcmask 261120   ;;  %vm159_vm3 = vcmask 781312  }
  0x39   :  { %193 = vmatpush3.bf16.msra.mxu0 %v208_v1  ;;  %v184_v12 = vld [vmem:[#allocation8] ss:$0 sm:$0xff]  ;;  %s312_s2 = smov [#allocation9]  }
  0x3a   :  { %194 = vmatprep.subr.bf16.mxu0 %v310_v0  ;;  %s167_s22 = sshll.u32 %s312_s2, 4  ;;  %s168_s22 = int_to_ptr.vmem [resolvable:$true] %s167_s22 }
  0x3b   :  { %s277_s23 = scalar_lea.vmem %s168_s22, 128  ;;  %p282_p11 = scmp.lt.s32.totalorder %s168_s22, %s168_s22 }
  0x3c   :  { %p278_p10 = scmp.ne.s32.totalorder %s168_s22, %s277_s23  ;;  %p283_p12 = scmp.lt.s32.totalorder %s277_s23, %s277_s23 }
  0x3d   :  { %195 = vmatpush3.bf16.msra.mxu0 %v209_v2 }
  0x3e   :  { %p284_p13 = por %p283_p12, %p282_p11 }
  0x3f   :  { %v62_v4 = vld [vmem:[#allocation2] sm:$0xff]  ;;  %v63_v6 = vld [vmem:[#allocation2 + $0x8] sm:$0xff] }
  0x40   :  { %197 = vmatmul.mubr.msk.bf16.vlgmr.msra.gmra.mrb[0].mxu0 %vm87_vm2, %v210_v3  ;;  %p285_p0 = pnand %p284_p13, %p278_p10 }
 0x113   :  { %v125_v5 = vpop.f32.mrb[0].mxu0 }
 0x114   :  { %v132_v7 = vadd.f32 %v125_v5, %v62_v4  ;;  %v198_v8 = vpop.f32.mrb[1].mxu0 }
 0x115   :  { %v128_v9 = vpop.f32.mrb[2].mxu0 }
 0x116   :  { %135 = vst.msk [vmem:[#allocation2] sm:$0xff] %vm59_vm0, %v132_v7  ;;  %v133_v10 = vadd.f32 %v128_v9, %v63_v6  ;;  %v199_v11 = vpop.f32.mrb[3].mxu0 }
 0x118   :  { %136 = vst.msk [vmem:[#allocation2 + $0x8] sm:$0xff] %vm59_vm0, %v133_v10 }
 0x11d   :  { %v140_v13 = vld [vmem:[#allocation2] sm:$0xff] }
 0x11e   :  { %v149_v14 = vadd.f32 %v184_v12, %v140_v13 }
 0x11f   :  { %v141_v15 = vld [vmem:[#allocation2 + $0x8] sm:$0xff] }
 0x120   :  { %v150_v16 = vadd.f32 %v184_v12, %v141_v15  ;;  %v187_v17 = vpack.c.bf16 %v149_v14, %v149_v14 }
 0x122   :  { %v188_v18 = vpack.c.bf16 %v150_v16, %v150_v16  ;;  %160 = vst.msk [vmem:[#allocation9] sm:$0xf] %vm159_vm3, %v187_v17 }
 0x124   :  { %161 = vst.msk [vmem:[#allocation9 + $0x4] sm:$0xf] %vm159_vm3, %v188_v18 }
 0x125   :  { %288 = shalt.err (!%p285_p0)
}
 0x126   :  { %s289_s28 = scalar_lea.hbm %s404_s3, 128 }
 0x127   :  { %p290_p1 = scmp.ne.s32.totalorder %s404_s3, %s289_s28  ;;  %p293_p2 = scmp.lt.u32.totalorder %s289_s28, %s404_s3 }
 0x129   :  { %p295_p3 = pnand %p293_p2, %p290_p1 }
 0x12b   :  { %298 = shalt.err (!%p295_p3)
}
 0x12c   :  { %173 = dma.vmem_to_hbm [thread:$0]  %s168_s22, 128, %s404_s3, [#allocation5], %s307_s24, %s307_s24, %s308_s25  }
 0x12d   :  { %303 = dma.done.wait [#allocation5], 128  }
 0x12e   :  { %304 = vsyncadd [#allocation5], 4294967168 }
 0x12f   :  { %177 = vsyncpa [#allocation4], 1 }
 0x130   :  { %178 = vsyncpa [#allocation7], 1 }
 0x131   :  { %179 = vsyncpa [#allocation5], 1 }

// kernel: _lambda_.5
= control target key start
LH: loop header
LB: loop body
LE: loop exit
PB: predicated region body
PF: predicated region fallthrough
CT: control target
= control target key end

     0   :  { %8 = vsyncpa [#allocation4], 0  ;;  %s385_s0 = inlined_call_operand.hbm [shape: bf16[16,32], index: 0, kind: input, shape index: {}]   ;;  %s386_s1 = inlined_call_operand.hbm [shape: bf16[32,32], index: 1, kind: input, shape index: {}]   ;;  %s387_s2 = inlined_call_operand.hbm [shape: f32[1,32], index: 2, kind: input, shape index: {}]   ;;  %s388_s3 = inlined_call_operand.hbm [shape: f32[16,32], index: 3, kind: output, shape index: {}]  }
   0x1   :  { %9 = vsyncpa [#allocation7], 0 }
   0x2   :  { %10 = vsyncpa [#allocation5], 0  ;;  %s293_s12 = smov [#allocation6]   ;;  %s294_s14 = smov [#allocation3]  }
   0x3   :  { %s28_s13 = sshll.u32 %s293_s12, 4  ;;  %s16_s15 = sshll.u32 %s294_s14, 4  ;;  %s29_s13 = int_to_ptr.vmem [resolvable:$true] %s28_s13  ;;  %s323_s15 = int_to_ptr.vmem [resolvable:$true] %s16_s15 }
   0x4   :  { %s199_s18 = scalar_lea.hbm %s386_s1, 256 }
   0x5   :  { %p200_p0 = scmp.ne.s32.totalorder %s386_s1, %s199_s18  ;;  %p203_p1 = scmp.lt.u32.totalorder %s199_s18, %s386_s1 }
   0x7   :  { %p205_p2 = pnand %p203_p1, %p200_p0 }
   0x9   :  { %208 = shalt.err (!%p205_p2)
}
   0xa   :  { %s209_s23 = scalar_lea.vmem %s29_s13, 256  ;;  %p214_p4 = scmp.lt.s32.totalorder %s29_s13, %s29_s13 }
   0xb   :  { %p210_p3 = scmp.ne.s32.totalorder %s29_s13, %s209_s23  ;;  %p215_p5 = scmp.lt.s32.totalorder %s209_s23, %s209_s23 }
   0xd   :  { %p216_p6 = por %p215_p5, %p214_p4 }
   0xf   :  { %p217_p7 = pnand %p216_p6, %p210_p3 }
  0x11   :  { %220 = shalt.err (!%p217_p7)
}
  0x12   :  { %s295_s24 = smov 64   ;;  %s296_s25 = smov 4  }
  0x13   :  { %34 = dma.hbm_to_vmem [thread:$0]  %s386_s1, 256, %s29_s13, [#allocation7], %s295_s24, %s295_s24, %s296_s25  }
  0x14   :  { %s221_s30 = scalar_lea.hbm %s385_s0, 128 }
  0x15   :  { %p222_p8 = scmp.ne.s32.totalorder %s385_s0, %s221_s30  ;;  %p225_p9 = scmp.lt.u32.totalorder %s221_s30, %s385_s0 }
  0x17   :  { %p227_p10 = pnand %p225_p9, %p222_p8 }
  0x19   :  { %230 = shalt.err (!%p227_p10)
}
  0x1a   :  { %s231_s8 = scalar_lea.vmem %s323_s15, 128  ;;  %p236_p12 = scmp.lt.s32.totalorder %s323_s15, %s323_s15 }
  0x1b   :  { %p232_p11 = scmp.ne.s32.totalorder %s323_s15, %s231_s8  ;;  %p237_p13 = scmp.lt.s32.totalorder %s231_s8, %s231_s8 }
  0x1d   :  { %p238_p0 = por %p237_p13, %p236_p12 }
  0x1f   :  { %p239_p1 = pnand %p238_p0, %p232_p11 }
  0x21   :  { %242 = shalt.err (!%p239_p1)
}
  0x22   :  { %22 = dma.hbm_to_vmem [thread:$0]  %s385_s0, 128, %s323_s15, [#allocation4], %s295_s24, %s295_s24, %s296_s25  }
  0x23   :  { %s297_s10 = smov [#allocation8]   ;;  %s243_s14 = scalar_lea.hbm %s387_s2, 16 }
  0x24   :  { %s41_s11 = sshll.u32 %s297_s10, 4  ;;  %p244_p2 = scmp.ne.s32.totalorder %s387_s2, %s243_s14  ;;  %s42_s11 = int_to_ptr.vmem [resolvable:$true] %s41_s11 }
  0x25   :  { %p247_p3 = scmp.lt.u32.totalorder %s243_s14, %s387_s2 }
  0x27   :  { %p249_p4 = pnand %p247_p3, %p244_p2 }
  0x29   :  { %252 = shalt.err (!%p249_p4)
}
  0x2a   :  { %s253_s20 = scalar_lea.vmem %s42_s11, 16  ;;  %s257_s0 = scalar_lea.vmem %s42_s11, 32 }
  0x2b   :  { %p254_p5 = scmp.ne.s32.totalorder %s42_s11, %s253_s20  ;;  %p258_p6 = scmp.lt.s32.totalorder %s42_s11, %s42_s11 }
  0x2c   :  { %p259_p7 = scmp.lt.s32.totalorder %s257_s0, %s253_s20 }
  0x2e   :  { %p260_p8 = por %p259_p7, %p258_p6 }
  0x30   :  { %p261_p9 = pnand %p260_p8, %p254_p5 }
  0x32   :  { %264 = shalt.err (!%p261_p9)
}
  0x33   :  { %44 = dma.hbm_to_vmem [thread:$0]  %s387_s2, 16, %s42_s11, [#allocation7]  }
  0x34   :  { %287 = dma.done.wait [#allocation4], 128  }
  0x35   :  { %288 = vsyncadd [#allocation4], 4294967168 }
  0x36   :  { %289 = dma.done.wait [#allocation7], 272  }
  0x37   :  { %290 = vsyncadd [#allocation7], 4294967024  ;;  %vm59_vm0 = vcmask 261120   ;;  %v298_v0 = vmov 0.0   ;;  %vm299_vm1 = vmmov 0   ;;  %v196_v1 = vld [vmem:[#allocation6] sm:$0xff]  }
  0x38   :  { %178 = vmatprep.subr.bf16.mxu0 %v298_v0  ;;  %182 = vmatprep.mubr.msk.bf16.mxu0 %vm299_vm1, %v298_v0  ;;  %60 = vst.msk [vmem:[#allocation2] sm:$0xff] %vm59_vm0, %v298_v0  ;;  %61 = vst.msk [vmem:[#allocation2 + $0x8] sm:$0xff] %vm59_vm0, %v298_v0  ;;  %v197_v2 = vld [vmem:[#allocation6 + $0x8] sm:$0xff]   ;;  %v198_v3 = vld [vmem:[#allocation3] sm:$0xff]   ;;  %s300_s2 = smov [#allocation9]  }
  0x39   :  { %179 = vmatpush3.bf16.msra.mxu0 %v196_v1  ;;  %v174_v12 = vld [vmem:[#allocation8] ss:$0 sm:$0xff]  ;;  %s157_s22 = sshll.u32 %s300_s2, 4  ;;  %s158_s22 = int_to_ptr.vmem [resolvable:$true] %s157_s22 }
  0x3a   :  { %180 = vmatprep.subr.bf16.mxu0 %v298_v0  ;;  %s265_s23 = scalar_lea.vmem %s158_s22, 256  ;;  %p270_p11 = scmp.lt.s32.totalorder %s158_s22, %s158_s22 }
  0x3b   :  { %p266_p10 = scmp.ne.s32.totalorder %s158_s22, %s265_s23  ;;  %p271_p12 = scmp.lt.s32.totalorder %s265_s23, %s265_s23 }
  0x3d   :  { %181 = vmatpush3.bf16.msra.mxu0 %v197_v2  ;;  %p272_p13 = por %p271_p12, %p270_p11 }
  0x3f   :  { %v62_v4 = vld [vmem:[#allocation2] sm:$0xff]  ;;  %v63_v6 = vld [vmem:[#allocation2 + $0x8] sm:$0xff]  ;;  %p273_p0 = pnand %p272_p13, %p266_p10 }
  0x40   :  { %183 = vmatmul.mubr.msk.bf16.vlgmr.msra.gmra.mrb[0].mxu0 %vm59_vm0, %v198_v3 }
 0x113   :  { %v125_v5 = vpop.f32.mrb[0].mxu0 }
 0x114   :  { %v132_v7 = vadd.f32 %v125_v5, %v62_v4  ;;  %v184_v8 = vpop.f32.mrb[1].mxu0 }
 0x115   :  { %v128_v9 = vpop.f32.mrb[2].mxu0 }
 0x116   :  { %134 = vst.msk [vmem:[#allocation2] sm:$0xff] %vm59_vm0, %v132_v7  ;;  %v133_v10 = vadd.f32 %v128_v9, %v63_v6  ;;  %v185_v11 = vpop.f32.mrb[3].mxu0 }
 0x118   :  { %135 = vst.msk [vmem:[#allocation2 + $0x8] sm:$0xff] %vm59_vm0, %v133_v10 }
 0x11d   :  { %v139_v13 = vld [vmem:[#allocation2] sm:$0xff] }
 0x11e   :  { %v148_v14 = vadd.f32 %v174_v12, %v139_v13 }
 0x11f   :  { %v140_v15 = vld [vmem:[#allocation2 + $0x8] sm:$0xff] }
 0x120   :  { %v149_v16 = vadd.f32 %v174_v12, %v140_v15  ;;  %150 = vst.msk [vmem:[#allocation9] sm:$0xff] %vm59_vm0, %v148_v14 }
 0x122   :  { %151 = vst.msk [vmem:[#allocation9 + $0x8] sm:$0xff] %vm59_vm0, %v149_v16 }
 0x123   :  { %276 = shalt.err (!%p273_p0)
}
 0x124   :  { %s277_s26 = scalar_lea.hbm %s388_s3, 256 }
 0x125   :  { %p278_p1 = scmp.ne.s32.totalorder %s388_s3, %s277_s26  ;;  %p281_p2 = scmp.lt.u32.totalorder %s277_s26, %s388_s3 }
 0x127   :  { %p283_p3 = pnand %p281_p2, %p278_p1 }
 0x129   :  { %286 = shalt.err (!%p283_p3)
}
 0x12a   :  { %s301_s4 = smov 128   ;;  %s302_s5 = smov 8  }
 0x12b   :  { %163 = dma.vmem_to_hbm [thread:$0]  %s158_s22, 256, %s388_s3, [#allocation5], %s301_s4, %s301_s4, %s302_s5  }
 0x12c   :  { %291 = dma.done.wait [#allocation5], 256  }
 0x12d   :  { %292 = vsyncadd [#allocation5], 4294967040 }
 0x12e   :  { %167 = vsyncpa [#allocation4], 1 }
 0x12f   :  { %168 = vsyncpa [#allocation7], 1 }
 0x130   :  { %169 = vsyncpa [#allocation5], 1 }

// kernel: _lambda_.4
= control target key start
LH: loop header
LB: loop body
LE: loop exit
PB: predicated region body
PF: predicated region fallthrough
CT: control target
= control target key end

     0   :  { %s2127_s0 = inlined_call_operand.hbm [shape: bf16[2,4,8,8], index: 0, kind: input, shape index: {}]   ;;  %s2128_s1 = inlined_call_operand.hbm [shape: bf16[2,4,8,8], index: 1, kind: input, shape index: {}]   ;;  %s2129_s2 = inlined_call_operand.hbm [shape: bf16[2,4,8,8], index: 2, kind: input, shape index: {}]   ;;  %s2130_s3 = inlined_call_operand.hbm [shape: f32[2,8,8], index: 3, kind: input, shape index: {}]   ;;  %s2131_s4 = inlined_call_operand.hbm [shape: bf16[2,8,32], index: 4, kind: output, shape index: {}]  }
   0x1   :  { %2144 = sst [smem:[#allocation23_spill]] %s2127_s0 }
   0x2   :  { %2145 = sst [smem:[#allocation24_spill]] %s2128_s1 }
   0x3   :  { %9 = vsyncpa [#allocation6], 0 }
   0x4   :  { %11 = vsyncpa [#allocation6 + $0x1], 0 }
   0x5   :  { %12 = vsyncpa [#allocation9], 0 }
   0x6   :  { %14 = vsyncpa [#allocation9 + $0x1], 0 }
   0x7   :  { %15 = vsyncpa [#allocation12], 0 }
   0x8   :  { %17 = vsyncpa [#allocation12 + $0x1], 0 }
   0x9   :  { %18 = vsyncpa [#allocation7], 0 }
   0xa   :  { %20 = vsyncpa [#allocation7 + $0x1], 0  ;;  %s1657_s15 = smov 0   ;;  %s1659_s16 = smov 0  }
   0xb   :  { %s1661_s17 = smov 0   ;;  %s1663_s18 = smov 0  }
   0xc   :  { %s1665_s19 = smov 0   ;;  %s1667_s20 = smov 0  }
   0xd LB: > { %2146 = sst [smem:[#allocation18_spill]] %s1602_s17  ;;  %s1688_s21 = sadd.s32 4294967295, %s1614_s20   ;;  %s1614_s20 = sphi %s1667_s20, %s26_s20   ;;  %s1610_s19 = sphi %s1665_s19, %s2178_s19   ;;  %s1606_s18 = sphi %s1663_s18, %s2177_s18   ;;  %s1602_s17 = sphi %s1661_s17, %s2173_s17   ;;  %s1598_s16 = sphi %s1659_s16, %s2176_s16   ;;  %s1594_s15 = sphi %s1657_s15, %s2175_s15  }
   0xe   : > { %2147 = sst [smem:[#allocation19_spill]] %s1614_s20  ;;  %s1180_s22 = sadd.s32 4294967294, %s1614_s20  }
   0xf   : > { %s45_s23 = sadd.s32 1, %s1610_s19  ;;  %s54_s24 = sadd.s32 1, %s1602_s17 }
  0x10   : > { %p47_p0 = scmp.ge.s32.totalorder %s45_s23, 2  ;;  %p61_p1 = scmp.ne.s32.totalorder %s1602_s17, %s1598_s16 }
  0x11   : > { %p62_p2 = scmp.eq.s32.totalorder %s1614_s20, 0  ;;  %p67_p3 = scmp.ne.s32.totalorder %s1598_s16, %s1594_s15 }
  0x12   : > { %s2180_s23 = smov (%p47_p0, %s45_s23), 0  ;;  %p68_p5 = scmp.eq.s32.totalorder %s1688_s21, 0 }
  0x13   : > { %2148 = sst [smem:[#allocation20_spill]] %s2180_s23  ;;  %p1700_p4 = por %p62_p2, %p61_p1 }
  0x14   : > { %s49_s26 = ssub.s32 %s1610_s19, %s2180_s23  ;;  %p179_p6 = scmp.eq.s32.totalorder %s1688_s21, 1 }
  0x15   : > { %p52_p7 = scmp.eq.s32.totalorder %s49_s26, 0  ;;  %p1708_p8 = por %p68_p5, %p67_p3 }
  0x16   : > { %p1712_p9 = por %p179_p6, %p61_p1  ;;  %p185_p10 = scmp.eq.s32.totalorder %s1180_s22, 1 }
  0x17   : > { %s2150_s27 = scalar_select %p1708_p8, 1, 0 }
  0x18   : > { %s2151_s28 = scalar_select %p1712_p9, 1, 0 }
  0x19   : > { %s1717_s29 = scalar_select %p52_p7, %s1602_s17, %s54_s24  }
  0x1a   : > { %p1719_p11 = por %p185_p10, %p67_p3  ;;  %p1315_p13 = scmp.lt.s32.totalorder %s1614_s20, 2 }
  0x1b   : > { %2152 = sst [smem:[#allocation21_spill]] %s1717_s29  ;;  %s1726_s5 = sand.u32 1, %s1602_s17  }
  0x1c   : > { %s2153_s30 = scalar_select %p1719_p11, 1, 0 }
  0x1d   : > { %s1729_s6 = sshll.u32 %s1726_s5, 4  ;;  %s1732_s7 = sshll.u32 %s1610_s19, 8 }
  0x1e   : > { %2154 = sst [smem:[#allocation22_spill]] %s2153_s30  ;;  %p1736_p0 = pnand %p1315_p13, %p1700_p4 }
  0x1f   : > { %s227_s9 = sand.u32 1, %s1614_s20   ;;  %s2156_s1 = sld [smem:[#allocation24_spill]] }
  0x20   : > { %s2155_s8 = scalar_select %p1736_p0, 1, 0 }
  0x21   : > { %s231_s13 = scalar_lea.vmem [#allocation8], %s1729_s6  ;;  %s1752_s22 = scalar_lea.sflag [#allocation9], %s227_s9 }
  0x22   : > { %s239_s14 = sshll.u32 %s231_s13, 4  ;;  %p1758_p4 = pneg %p1736_p0  ;;  %s1749_s14 = int_to_ptr.vmem [resolvable:$true] %s239_s14 }
  0x25   : > { %s1745_s12 = scalar_lea.hbm %s2156_s1, %s1732_s7  ;;  %s1409_s11 = scalar_lea.hbm %s2156_s1, 512 }
  0x26   : > { %s1404_s24 = scalar_lea.hbm %s1745_s12, 256  ;;  %p1410_p7 = scmp.lt.u32.totalorder %s1745_s12, %s2156_s1 }
  0x27   : > { %p1405_p3 = scmp.ne.s32.totalorder %s1745_s12, %s1404_s24  ;;  %p1411_p10 = scmp.lt.u32.totalorder %s1409_s11, %s1404_s24 }
  0x28   : > { %p1413_p12 = scmp.lt.u32.totalorder %s1404_s24, %s1745_s12 }
  0x29   : > { %p1407_p5 = pnand %p1758_p4, %p1405_p3  ;;  %p1412_p13 = por %p1411_p10, %p1410_p7 }
  0x2b   : > { %p1408_p6 = pneg %p1407_p5  ;;  %p1414_p1 = por %p1413_p12, %p1412_p13 }
  0x2d   : > { %p1415_p2 = pnand %p1414_p1, %p1408_p6 }
  0x2f   : > { %1418 = shalt.err (!%p1415_p2)
}
  0x30   : > { %s1419_s9 = scalar_lea.vmem %s1749_s14, 256  ;;  %s1616_s26 = smov [#allocation8]  }
  0x31   : > { %p1420_p3 = scmp.ne.s32.totalorder %s1749_s14, %s1419_s9  ;;  %s1424_s10 = sshll.u32 %s1616_s26, 4  ;;  %s1425_s10 = int_to_ptr.vmem [resolvable:$false] %s1424_s10 }
  0x32   : > { %s1426_s23 = scalar_lea.vmem %s1425_s10, 512  ;;  %p1427_p9 = scmp.lt.s32.totalorder %s1749_s14, %s1425_s10 }
  0x33   : > { %p1422_p5 = pnand %p1420_p3, %p1758_p4  ;;  %p1428_p8 = scmp.lt.s32.totalorder %s1426_s23, %s1419_s9 }
  0x35   : > { %p1423_p11 = pneg %p1422_p5  ;;  %p1429_p7 = por %p1428_p8, %p1427_p9 }
  0x37   : > { %p1430_p10 = pnand %p1429_p7, %p1423_p11 }
  0x39   : > { %1433 = shalt.err (!%p1430_p10)
}
  0x3a   : > { %s2135_s24 = smov 64   ;;  %s2137_s11 = smov 4  }
  0x3b   : > { %1304 = dma.hbm_to_vmem [thread:$0]  (!%p1736_p0), %s1745_s12, 256, %s1749_s14, %s1752_s22, %s2135_s24, %s2135_s24, %s2137_s11  }
  0x3c   : > { %p2158_p8 = scmp.lt.s32.totalorder %s1614_s20, 3  ;;  %p2159_p9 = scmp.ge.s32.totalorder %s1614_s20, 1 }
  0x3d   : > { %s2161_s0 = sld [smem:[#allocation23_spill]]  ;;  %s209_s23 = scalar_lea.vmem [#allocation5], %s1729_s6 }
  0x3e   : > { %p1789_p11 = pnand %p2159_p9, %p2158_p8  ;;  %s217_s1 = sshll.u32 %s209_s23, 4  ;;  %s1800_s1 = int_to_ptr.vmem [resolvable:$true] %s217_s1 }
  0x3f   : > { %s1806_s24 = scalar_lea.hbm %s2129_s2, %s1732_s7  ;;  %s206_s11 = scalar_lea.sflag [#allocation6], %s1726_s5 }
  0x40   : > { %s2160_s13 = scalar_select %p1789_p11, 1, 0 }
  0x43   : > { %s1797_s10 = scalar_lea.hbm %s2161_s0, %s1732_s7  ;;  %s1439_s17 = scalar_lea.hbm %s2161_s0, 512 }
  0x44   : > { %s1434_s29 = scalar_lea.hbm %s1797_s10, 256  ;;  %p1440_p6 = scmp.lt.u32.totalorder %s1797_s10, %s2161_s0 }
  0x45   : > { %p1435_p12 = scmp.ne.s32.totalorder %s1797_s10, %s1434_s29  ;;  %p1441_p13 = scmp.lt.u32.totalorder %s1439_s17, %s1434_s29 }
  0x46   : > { %p1443_p5 = scmp.lt.u32.totalorder %s1434_s29, %s1797_s10 }
  0x47   : > { %p1437_p1 = pnand %p1435_p12, %p1758_p4  ;;  %p1442_p3 = por %p1441_p13, %p1440_p6 }
  0x49   : > { %p1438_p2 = pneg %p1437_p1  ;;  %p1444_p7 = por %p1443_p5, %p1442_p3 }
  0x4b   : > { %p1445_p10 = pnand %p1444_p7, %p1438_p2 }
  0x4d   : > { %1448 = shalt.err (!%p1445_p10)
}
  0x4e   : > { %s1449_s7 = scalar_lea.vmem %s1800_s1, 256  ;;  %s1619_s23 = smov [#allocation5]  }
  0x4f   : > { %p1450_p8 = scmp.ne.s32.totalorder %s1800_s1, %s1449_s7  ;;  %s1454_s12 = sshll.u32 %s1619_s23, 4  ;;  %s1455_s12 = int_to_ptr.vmem [resolvable:$false] %s1454_s12 }
  0x50   : > { %s1456_s20 = scalar_lea.vmem %s1455_s12, 512  ;;  %p1457_p1 = scmp.lt.s32.totalorder %s1800_s1, %s1455_s12 }
  0x51   : > { %p1452_p9 = pnand %p1450_p8, %p1758_p4  ;;  %p1458_p11 = scmp.lt.s32.totalorder %s1456_s20, %s1449_s7 }
  0x53   : > { %p1453_p12 = pneg %p1452_p9  ;;  %p1459_p6 = por %p1458_p11, %p1457_p1 }
  0x55   : > { %p1460_p13 = pnand %p1459_p6, %p1453_p12 }
  0x57   : > { %1463 = shalt.err (!%p1460_p13)
}
  0x58   : > { %s2162_s17 = smov 4   ;;  %s2163_s29 = smov 64  }
  0x59   : > { %1301 = dma.hbm_to_vmem [thread:$0]  (!%p1736_p0), %s1797_s10, 256, %s1800_s1, %s206_s11, %s2163_s29, %s2163_s29, %s2162_s17  }
  0x5a   : > { %s253_s30 = scalar_lea.vmem [#allocation10], %s1729_s6  ;;  %s1192_s9 = sshll.u32 %s1726_s5, 3 }
  0x5b   : > { %s261_s14 = sshll.u32 %s253_s30, 4  ;;  %s1464_s26 = scalar_lea.hbm %s1806_s24, 256  ;;  %s1836_s14 = int_to_ptr.vmem [resolvable:$true] %s261_s14 }
  0x5c   : > { %p1465_p11 = scmp.ne.s32.totalorder %s1806_s24, %s1464_s26  ;;  %s1469_s12 = scalar_lea.hbm %s2129_s2, 512 }
  0x5d   : > { %p1470_p5 = scmp.lt.u32.totalorder %s1806_s24, %s2129_s2  ;;  %p1471_p7 = scmp.lt.u32.totalorder %s1469_s12, %s1464_s26 }
  0x5e   : > { %p1467_p2 = pnand %p1465_p11, %p1758_p4  ;;  %p1473_p8 = scmp.lt.u32.totalorder %s1464_s26, %s1806_s24 }
  0x5f   : > { %p1472_p10 = por %p1471_p7, %p1470_p5 }
  0x60   : > { %p1468_p3 = pneg %p1467_p2 }
  0x61   : > { %p1474_p9 = por %p1473_p8, %p1472_p10 }
  0x63   : > { %p1475_p12 = pnand %p1474_p9, %p1468_p3 }
  0x65   : > { %1478 = shalt.err (!%p1475_p12)
}
  0x66   : > { %s1479_s1 = scalar_lea.vmem %s1836_s14, 256  ;;  %s1620_s6 = smov [#allocation10]  }
  0x67   : > { %p1480_p1 = scmp.ne.s32.totalorder %s1836_s14, %s1479_s1  ;;  %s1484_s11 = sshll.u32 %s1620_s6, 4  ;;  %s1485_s11 = int_to_ptr.vmem [resolvable:$false] %s1484_s11 }
  0x68   : > { %s1486_s0 = scalar_lea.vmem %s1485_s11, 512  ;;  %p1487_p11 = scmp.lt.s32.totalorder %s1836_s14, %s1485_s11 }
  0x69   : > { %p1482_p6 = pnand %p1480_p1, %p1758_p4  ;;  %p1488_p2 = scmp.lt.s32.totalorder %s1486_s0, %s1479_s1 }
  0x6b   : > { %p1483_p13 = pneg %p1482_p6  ;;  %p1489_p5 = por %p1488_p2, %p1487_p11 }
  0x6d   : > { %p1490_p7 = pnand %p1489_p5, %p1483_p13 }
  0x6f   : > { %1493 = shalt.err (!%p1490_p7)
}
  0x70   : > { %1307 = dma.hbm_to_vmem [thread:$0]  (!%p1736_p0), %s1806_s24, 256, %s1836_s14, %s1752_s22, %s2163_s29, %s2163_s29, %s2162_s17  }
  0x71   : > { %s1193_s10 = sshll.u32 %s1610_s19, 7  ;;  %s275_s23 = scalar_lea.vmem [#allocation11], %s1192_s9 }
  0x72   : > { %s1868_s7 = scalar_lea.hbm %s2130_s3, %s1193_s10  ;;  %s284_s12 = sshll.u32 %s275_s23, 4  ;;  %s285_s12 = int_to_ptr.vmem [resolvable:$true] %s284_s12 }
  0x73   : > { %s272_s20 = scalar_lea.sflag [#allocation12], %s1726_s5  ;;  %s1494_s1 = scalar_lea.hbm %s1868_s7, 128 }
  0x74   : > { %p1495_p3 = scmp.ne.s32.totalorder %s1868_s7, %s1494_s1  ;;  %s1499_s17 = scalar_lea.hbm %s2130_s3, 256 }
  0x75   : > { %p1500_p9 = scmp.lt.u32.totalorder %s1868_s7, %s2130_s3  ;;  %p1501_p12 = scmp.lt.u32.totalorder %s1499_s17, %s1494_s1 }
  0x76   : > { %p1497_p10 = pnand %p1495_p3, %p1758_p4  ;;  %p1503_p6 = scmp.lt.u32.totalorder %s1494_s1, %s1868_s7 }
  0x77   : > { %p1502_p1 = por %p1501_p12, %p1500_p9 }
  0x78   : > { %p1498_p8 = pneg %p1497_p10 }
  0x79   : > { %p1504_p13 = por %p1503_p6, %p1502_p1 }
  0x7b   : > { %p1505_p11 = pnand %p1504_p13, %p1498_p8 }
  0x7d   : > { %1508 = shalt.err (!%p1505_p11)
}
  0x7e   : > { %s1509_s5 = scalar_lea.vmem %s285_s12, 128  ;;  %s1621_s9 = smov [#allocation11]  }
  0x7f   : > { %p1510_p2 = scmp.ne.s32.totalorder %s285_s12, %s1509_s5  ;;  %s1514_s6 = sshll.u32 %s1621_s9, 4  ;;  %s1515_s6 = int_to_ptr.vmem [resolvable:$false] %s1514_s6 }
  0x80   : > { %s1516_s11 = scalar_lea.vmem %s1515_s6, 256  ;;  %p1517_p3 = scmp.lt.s32.totalorder %s285_s12, %s1515_s6 }
  0x81   : > { %p1512_p5 = pnand %p1510_p2, %p1758_p4  ;;  %p1518_p10 = scmp.lt.s32.totalorder %s1516_s11, %s1509_s5 }
  0x83   : > { %p1513_p7 = pneg %p1512_p5  ;;  %p1519_p0 = por %p1518_p10, %p1517_p3 }
  0x85   : > { %p1520_p9 = pnand %p1519_p0, %p1513_p7 }
  0x87   : > { %1523 = shalt.err (!%p1520_p9)
}
  0x88   : > { %p2164_p12 = scmp.ne.s32.totalorder %s2155_s8, 0  ;;  %p2165_p8 = scmp.ne.s32.totalorder %s2160_s13, 0 }
  0x89   : > { %s1893_s25 = sand.u32 (!%p2165_p8), 1, %s1598_s16   ;;  %p2166_p4 = scmp.ne.s32.totalorder (!%p2165_p8), %s2150_s27, 0 }
  0x8a   : > { %1310 = dma.hbm_to_vmem [thread:$0]  (!%p2164_p12), %s1868_s7, 128, %s285_s12, %s272_s20  }
  0x8b   : > { %293 = sbr.rel (%p2165_p8) target bundleno = 1382 (0x566), region = 36  ;;  %s1195_s0 = sshll.u32 (!%p2165_p8), %s1893_s25, 4 }
  0x8c   : > { %s296_s10 = scalar_lea.sflag (!%p2165_p8), [#allocation6], %s1893_s25  ;;  %s1897_s30 = scalar_lea.vmem (!%p2165_p8), [#allocation5], %s1195_s0 }
  0x92   : > { %1577 = dma.done.wait (%p2166_p4), %s296_s10, 256  }
  0x93   : > { %1579 = vsyncadd (%p2166_p4), %s296_s10, 4294967040  ;;  %s304_s8 = sand.u32 1, %s1688_s21   ;;  %s1904_s26 = scalar_lea.vmem [#allocation8], %s1195_s0 }
  0x94   : > { %s305_s13 = scalar_lea.sflag [#allocation9], %s304_s8 }
  0x95   : > { %1581 = dma.done.wait (%p2166_p4), %s305_s13, 512  }
  0x96   : > { %1583 = vsyncadd (%p2166_p4), %s305_s13, 4294966784  ;;  %s1198_s7 = sshll.u32 %s1893_s25, 3  ;;  %s1911_s23 = scalar_lea.vmem [#allocation10], %s1195_s0 }
  0x97   : > { %s323_s12 = scalar_lea.sflag [#allocation12], %s1893_s25  ;;  %s326_s20 = scalar_lea.vmem [#allocation11], %s1198_s7 }
  0x98   : > { %1585 = dma.done.wait (%p2166_p4), %s323_s12, 128  }
  0x99   : > { %1587 = vsyncadd (%p2166_p4), %s323_s12, 4294967168  ;;  %vm371_vm0 = vcmask 7168   ;;  %s1199_s21 = sshll.u32 %s1893_s25, 2  ;;  %v1622_v0 = vmov -1e+30   ;;  %v1623_v1 = vmov 0.0  }
  0x9a   : > { %372 = vst.msk [vmem:[#allocation2] sm:$0xff] %vm371_vm0, %v1622_v0  ;;  %373 = vst.msk [vmem:[#allocation2 + $0x8] sm:$0xff] %vm371_vm0, %v1622_v0  ;;  %vm380_vm1 = vcmask 64512   ;;  %v1931_v2 = vld [vmem:[%s326_s20] sm:$0xff]  ;;  %s1939_s1 = scalar_lea.vmem [#allocation13], %s1199_s21 }
  0x9b   : > { %374 = vst.msk [vmem:[#allocation2 + $0x10] sm:$0xff] %vm371_vm0, %v1622_v0  ;;  %375 = vst.msk [vmem:[#allocation2 + $0x18] sm:$0xff] %vm371_vm0, %v1622_v0  ;;  %vm386_vm2 = vcmp.ne.f32.partialorder %v1931_v2, 0.0 }
  0x9c   : > { %376 = vst.msk [vmem:[#allocation3] sm:$0xff] %vm371_vm0, %v1623_v1  ;;  %377 = vst.msk [vmem:[#allocation3 + $0x8] sm:$0xff] %vm371_vm0, %v1623_v1  ;;  %v1200_v3 = vsel %vm386_vm2, 1.0, %v1623_v1 }
  0x9d   : > { %378 = vst.msk [vmem:[#allocation3 + $0x10] sm:$0xff] %vm371_vm0, %v1623_v1  ;;  %379 = vst.msk [vmem:[#allocation3 + $0x18] sm:$0xff] %vm371_vm0, %v1623_v1  ;;  %v390_v4 = vsel %vm380_vm1, %v1200_v3, -inf }
  0x9e   : > { %381 = vst.msk [vmem:[#allocation4] sm:$0xff] %vm380_vm1, %v1623_v1  ;;  %382 = vst.msk [vmem:[#allocation4 + $0x8] sm:$0xff] %vm380_vm1, %v1623_v1  ;;  %391 = vmax.xlane.f32.xlu0 %v390_v4 }
  0x9f   : > { %383 = vst.msk [vmem:[#allocation4 + $0x10] sm:$0xff] %vm380_vm1, %v1623_v1  ;;  %384 = vst.msk [vmem:[#allocation4 + $0x18] sm:$0xff] %vm380_vm1, %v1623_v1 }
 0x12b   : > { %v392_v5 = vpop.xlane.xlu0 %391 }
 0x12c   : > { %v393_v6 = vrot.slane %v392_v5, 4 }
 0x12e   : > { %v394_v7 = vmax.f32 %v392_v5, %v393_v6 }
 0x130   : > { %v395_v8 = vrot.slane %v394_v7, 2 }
 0x132   : > { %v396_v9 = vmax.f32 %v394_v7, %v395_v8 }
 0x134   : > { %v397_v10 = vrot.slane %v396_v9, 1 }
 0x136   : > { %v398_v11 = vmax.f32 %v396_v9, %v397_v10 }
 0x138   : > { %1286 = vpush %v398_v11 }
 0x169   : > { %s1287_s27 = spop %1286 }
 0x16a   : > { %p400_p0 = scmp.gt.f32.partialorder %s1287_s27, 0.5 }
 0x16b   : > { %v408_v12 = vld [vmem:[%s1904_s26] sm:$0xf] (%p400_p0)  ;;  %v409_v13 = vld [vmem:[%s1904_s26 + $0x4] sm:$0xf] (%p400_p0)  ;;  %v1624_v14 = vmov (%p400_p0), 0.0   ;;  %vm1625_vm3 = vmmov (%p400_p0), 0  }
 0x16c   : > { %403 = sbr.rel (!%p400_p0) target bundleno = 1103 (0x44f), region = 60  ;;  %1238 = vmatprep.subr.bf16.mxu0 (%p400_p0), %v1624_v14  ;;  %v420_v15 = vsel (%p400_p0), %vm380_vm1, %v408_v12, 0  ;;  %1244 = vmatprep.subr.bf16.mxu1 (%p400_p0), %v1624_v14  ;;  %v466_v16 = vsel (%p400_p0), %vm380_vm1, %v409_v13, 0  ;;  %v410_v17 = vld [vmem:[%s1904_s26 + $0x8] sm:$0xf] (%p400_p0)  ;;  %v1626_v49 = vmov (%p400_p0), 0  }
 0x16d   : > { %1239 = vmatpush3.bf16.xpose.msra.mxu0 (%p400_p0), %v420_v15  ;;  %1245 = vmatpush3.bf16.xpose.msra.mxu1 (%p400_p0), %v466_v16  ;;  %v411_v18 = vld [vmem:[%s1904_s26 + $0xc] sm:$0xf] (%p400_p0)  ;;  %v404_v19 = vld [vmem:[%s1897_s30] sm:$0xf] (%p400_p0)  ;;  %v405_v20 = vld [vmem:[%s1897_s30 + $0x4] sm:$0xf] (%p400_p0) }
 0x16e   : > { %1240 = vmatprep.mubr.msk.bf16.mxu0 (%p400_p0), %vm1625_vm3, %v1624_v14  ;;  %1250 = vmatprep.subr.bf16.mxu0 (%p400_p0), %v1624_v14  ;;  %v512_v21 = vsel (%p400_p0), %vm380_vm1, %v410_v17, 0  ;;  %v558_v22 = vsel (%p400_p0), %vm380_vm1, %v411_v18, 0  ;;  %v406_v23 = vld [vmem:[%s1897_s30 + $0x8] sm:$0xf] (%p400_p0)  ;;  %v407_v24 = vld [vmem:[%s1897_s30 + $0xc] sm:$0xf] (%p400_p0) }
 0x16f   : > { %1246 = vmatprep.mubr.msk.bf16.mxu1 (%p400_p0), %vm1625_vm3, %v1624_v14  ;;  %1256 = vmatprep.subr.bf16.mxu1 (%p400_p0), %v1624_v14  ;;  %v605_v50 = vld [vmem:[#allocation2] sm:$0xff] (%p400_p0)  ;;  %v1996_v53 = vld [vmem:[#allocation2 + $0x8] sm:$0xff] (%p400_p0)  ;;  %v607_v58 = vld [vmem:[#allocation2 + $0x10] sm:$0xff] (%p400_p0)  ;;  %vm737_vm4 = vcmask (%p400_p0), 1043456  }
 0x170   : > { %1376 = vset.pattern.permute.xlu0 (%p400_p0), %v1626_v49  ;;  %1377 = vset.pattern.permute.xlu1 (%p400_p0), %v1626_v49  ;;  %v2007_v62 = vld [vmem:[#allocation2 + $0x18] sm:$0xff] (%p400_p0)  ;;  %v412_v4 = vld [vmem:[%s1911_s23] sm:$0xf] (%p400_p0)  ;;  %v413_v7 = vld [vmem:[%s1911_s23 + $0x4] sm:$0xf] (%p400_p0) }
 0x171   : > { %v739_v6 = vsel (%p400_p0), %vm737_vm4, %v412_v4, 0  ;;  %v785_v8 = vsel (%p400_p0), %vm737_vm4, %v413_v7, 0 }
 0x174   : > { %1241 = vmatmul.mubr.msk.bf16.vlgmr.msra.gmra.mrb[0].mxu0 %vm380_vm1, %v404_v19  ;;  %1247 = vmatmul.mubr.msk.bf16.vlgmr.msra.gmra.mrb[0].mxu1 %vm380_vm1, %v405_v20 }
 0x175   : > { %1251 = vmatpush3.bf16.xpose.msra.mxu0 %v512_v21  ;;  %1257 = vmatpush3.bf16.xpose.msra.mxu1 %v558_v22  ;;  %v414_v21 = vld [vmem:[%s1911_s23 + $0x8] sm:$0xf] }
 0x176   : > { %1252 = vmatprep.mubr.msk.bf16.mxu0 %vm1625_vm3, %v1624_v14  ;;  %1258 = vmatprep.mubr.msk.bf16.mxu1 %vm1625_vm3, %v1624_v14 }
 0x177   : > { %1262 = vmatprep.subr.bf16.mxu0 %v1624_v14  ;;  %1268 = vmatprep.subr.bf16.mxu1 %v1624_v14 }
 0x17c   : > { %1253 = vmatmul.mubr.msk.bf16.vlgmr.msra.gmra.mrb[4].mxu0 %vm380_vm1, %v406_v23  ;;  %1259 = vmatmul.mubr.msk.bf16.vlgmr.msra.gmra.mrb[4].mxu1 %vm380_vm1, %v407_v24 }
 0x17d   : > { %1264 = vmatprep.mubr.msk.bf16.mxu0 %vm1625_vm3, %v1624_v14  ;;  %1270 = vmatprep.mubr.msk.bf16.mxu1 %vm1625_vm3, %v1624_v14 }
 0x17e   : > { %1263 = vmatpush3.bf16.msra.mxu0 %v739_v6  ;;  %1269 = vmatpush3.bf16.msra.mxu1 %v785_v8 }
 0x17f   : > { %1274 = vmatprep.subr.bf16.mxu0 %v1624_v14  ;;  %1280 = vmatprep.subr.bf16.mxu1 %v1624_v14 }
 0x247   : > { %v456_v25 = vpop.f32.mrb[0].mxu0  ;;  %v502_v26 = vpop.f32.mrb[0].mxu1 }
 0x248   : > { %v1977_v27 = vsel %vm386_vm2, %v456_v25, -1e+30  ;;  %v1242_v28 = vpop.f32.mrb[1].mxu0  ;;  %v1981_v29 = vsel %vm386_vm2, %v502_v26, -1e+30  ;;  %v1248_v30 = vpop.f32.mrb[1].mxu1 }
 0x249   : > { %v459_v31 = vpop.f32.mrb[2].mxu0  ;;  %v609_v32 = vsel %vm380_vm1, %v1977_v27, -inf  ;;  %v505_v33 = vpop.f32.mrb[2].mxu1  ;;  %v612_v36 = vsel %vm380_vm1, %v1981_v29, -inf  ;;  %v415_v28 = vld [vmem:[%s1911_s23 + $0xc] sm:$0xf] }
 0x24a   : > { %610 = vmax.xlane.f32.xlu0 %v609_v32  ;;  %v1243_v34 = vpop.f32.mrb[3].mxu0  ;;  %v1249_v35 = vpop.f32.mrb[3].mxu1 }
 0x24b   : > { %v877_v34 = vsel %vm737_vm4, %v415_v28, 0 }
 0x24e   : > { %613 = vmax.xlane.f32.xlu0 %v612_v36 }
 0x24f   : > { %v548_v37 = vpop.f32.mrb[4].mxu0  ;;  %v594_v38 = vpop.f32.mrb[4].mxu1 }
 0x250   : > { %v603_v39 = vsel %vm386_vm2, %v548_v37, -1e+30  ;;  %v1254_v40 = vpop.f32.mrb[5].mxu0  ;;  %v1991_v41 = vsel %vm386_vm2, %v594_v38, -1e+30  ;;  %v1260_v42 = vpop.f32.mrb[5].mxu1 }
 0x251   : > { %v551_v43 = vpop.f32.mrb[6].mxu0  ;;  %v615_v44 = vsel %vm380_vm1, %v603_v39, -inf  ;;  %v597_v45 = vpop.f32.mrb[6].mxu1  ;;  %v618_v48 = vsel %vm380_vm1, %v1991_v41, -inf }
 0x252   : > { %616 = vmax.xlane.f32.xlu1 %v615_v44  ;;  %v1255_v46 = vpop.f32.mrb[7].mxu0  ;;  %v1261_v47 = vpop.f32.mrb[7].mxu1 }
 0x253   : > { %v673_v47 = vld [vmem:[#allocation3] sm:$0xff] }
 0x256   : > { %619 = vmax.xlane.f32.xlu1 %v618_v48 }
 0x2d7   : > { %v611_v51 = vpop.xlane.xlu0 %610 }
 0x2d8   : > { %v621_v52 = vmax.f32 %v605_v50, %v611_v51 }
 0x2da   : > { %v625_v54 = vsub.f32 %v605_v50, %v621_v52  ;;  %927 = vst.msk [vmem:[#allocation2] sm:$0xff] %vm371_vm0, %v621_v52  ;;  %639 = vperm.xlu0 %1376, %v621_v52   ;;  %v674_v50 = vld [vmem:[#allocation3 + $0x8] sm:$0xff] }
 0x2db   : > { %v614_v55 = vpop.xlane.xlu0 %613 }
 0x2dc   : > { %v629_v56 = vmul.f32 1.442695, %v625_v54  ;;  %v2000_v57 = vmax.f32 %v1996_v53, %v614_v55 }
 0x2de   : > { %1378 = vpow2.f32 %v629_v56  ;;  %v626_v59 = vsub.f32 %v1996_v53, %v2000_v57  ;;  %928 = vst.msk [vmem:[#allocation2 + $0x8] sm:$0xff] %vm371_vm0, %v2000_v57  ;;  %644 = vperm.xlu1 %1377, %v2000_v57   ;;  %v675_v56 = vld [vmem:[#allocation3 + $0x10] sm:$0xff] }
 0x2df   : > { %v617_v60 = vpop.xlane.xlu1 %616 }
 0x2e0   : > { %v623_v61 = vmax.f32 %v607_v58, %v617_v60  ;;  %v631_v40 = vmul.f32 1.442695, %v626_v59  ;;  %v676_v59 = vld [vmem:[#allocation3 + $0x18] sm:$0xff] }
 0x2e2   : > { %v627_v63 = vsub.f32 %v607_v58, %v623_v61  ;;  %929 = vst.msk [vmem:[#allocation2 + $0x10] sm:$0xff] %vm371_vm0, %v623_v61  ;;  %649 = vperm.xlu1 %1377, %v623_v61  }
 0x2e3   : > { %v620_v0 = vpop.xlane.xlu1 %619 }
 0x2e4   : > { %v2011_v1 = vmax.f32 %v2007_v62, %v620_v0  ;;  %v633_v30 = vmul.f32 1.442695, %v627_v63  ;;  %v702_v0 = vld [vmem:[#allocation4] sm:$0xff] }
 0x2e6   : > { %v628_v3 = vsub.f32 %v2007_v62, %v2011_v1  ;;  %930 = vst.msk [vmem:[#allocation2 + $0x18] sm:$0xff] %vm371_vm0, %v2011_v1  ;;  %654 = vperm.xlu1 %1377, %v2011_v1  }
 0x2e8   : > { %v2019_v5 = vpop.eup %1378  ;;  %v635_v2 = vmul.f32 1.442695, %v628_v3  ;;  %v703_v3 = vld [vmem:[#allocation4 + $0x8] sm:$0xff] }
 0x2e9   : > { %v677_v48 = vmul.f32 %v2019_v5, %v673_v47 }
 0x2ea   : > { %708 = vperm.xlu1 %1377, %v2019_v5  }
 0x359   : > { %v640_v9 = vpop.permute.xlu0 %639 }
 0x35a   : > { %v657_v10 = vsub.f32 %v1977_v27, %v640_v9  ;;  %v831_v27 = vsel %vm737_vm4, %v414_v21, 0 }
 0x35c   : > { %v661_v11 = vmul.f32 1.442695, %v657_v10 }
 0x35d   : > { %v645_v12 = vpop.permute.xlu1 %644 }
 0x35e   : > { %1380 = vpow2.f32 %v661_v11  ;;  %v658_v13 = vsub.f32 %v1981_v29, %v645_v12  ;;  %v704_v11 = vld [vmem:[#allocation4 + $0x10] sm:$0xff] }
 0x360   : > { %v663_v15 = vmul.f32 1.442695, %v658_v13 }
 0x361   : > { %v650_v16 = vpop.permute.xlu1 %649 }
 0x362   : > { %1382 = vpow2.f32 %v663_v15  ;;  %v659_v17 = vsub.f32 %v603_v39, %v650_v16 }
 0x364   : > { %v665_v18 = vmul.f32 1.442695, %v659_v17 }
 0x365   : > { %v655_v19 = vpop.permute.xlu1 %654 }
 0x366   : > { %1384 = vpow2.f32 %v665_v18  ;;  %v660_v20 = vsub.f32 %v1991_v41, %v655_v19  ;;  %v705_v19 = vld [vmem:[#allocation4 + $0x18] sm:$0xff] }
 0x368   : > { %v1381_v22 = vpop.eup %1380  ;;  %v667_v23 = vmul.f32 1.442695, %v660_v20 }
 0x369   : > { %v669_v24 = vsel %vm386_vm2, %v1381_v22, 0.0  ;;  %v709_v46 = vpop.permute.xlu1 %708 }
 0x36a   : > { %1386 = vpow2.f32 %v667_v23  ;;  %v681_v25 = vsel %vm380_vm1, %v669_v24, 0.0  ;;  %v730_v26 = vpack.c.bf16 %v669_v24, %v669_v24  ;;  %v726_v1 = vmul.f32 %v709_v46, %v702_v0 }
 0x36b   : > { %682 = vadd.xlane.f32.xlu1 %v681_v25  ;;  %1388 = vpow2.f32 %v633_v30 }
 0x36c   : > { %v1383_v29 = vpop.eup %1382  ;;  %1265 = vmatmul.mubr.msk.bf16.vlgmr.msra.gmra.mrb[8].mxu0 %vm380_vm1, %v730_v26  ;;  %1390 = vpow2.f32 %v631_v40 }
 0x36d   : > { %v670_v31 = vsel %vm386_vm2, %v1383_v29, 0.0  ;;  %1275 = vmatpush3.bf16.msra.mxu0 %v831_v27  ;;  %1276 = vmatprep.mubr.msk.bf16.mxu0 %vm1625_vm3, %v1624_v14  ;;  %1392 = vpow2.f32 %v635_v2 }
 0x36e   : > { %v684_v32 = vsel %vm380_vm1, %v670_v31, 0.0  ;;  %v731_v33 = vpack.c.bf16 %v670_v31, %v670_v31 }
 0x36f   : > { %685 = vadd.xlane.f32.xlu0 %v684_v32 }
 0x370   : > { %v1385_v35 = vpop.eup %1384  ;;  %1271 = vmatmul.mubr.msk.bf16.vlgmr.msra.gmra.mrb[8].mxu1 %vm380_vm1, %v731_v33 }
 0x371   : > { %v671_v36 = vsel %vm386_vm2, %v1385_v35, 0.0  ;;  %1281 = vmatpush3.bf16.msra.mxu1 %v877_v34  ;;  %1282 = vmatprep.mubr.msk.bf16.mxu1 %vm1625_vm3, %v1624_v14 }
 0x372   : > { %v732_v37 = vpack.c.bf16 %v671_v36, %v671_v36  ;;  %v687_v14 = vsel %vm380_vm1, %v671_v36, 0.0 }
 0x374   : > { %v1387_v38 = vpop.eup %1386  ;;  %1277 = vmatmul.mubr.msk.bf16.vlgmr.msra.gmra.mrb[12].mxu0 %vm380_vm1, %v732_v37 }
 0x375   : > { %v672_v39 = vsel %vm386_vm2, %v1387_v38, 0.0  ;;  %v1389_v42 = vpop.eup %1388 }
 0x376   : > { %v733_v41 = vpack.c.bf16 %v672_v39, %v672_v39  ;;  %v1391_v43 = vpop.eup %1390  ;;  %v690_v44 = vsel %vm380_vm1, %v672_v39, 0.0  ;;  %v679_v57 = vmul.f32 %v1389_v42, %v675_v56 }
 0x377   : > { %v1393_v45 = vpop.eup %1392  ;;  %v678_v52 = vmul.f32 %v1391_v43, %v674_v50 }
 0x378   : > { %1283 = vmatmul.mubr.msk.bf16.vlgmr.msra.gmra.mrb[12].mxu1 %vm380_vm1, %v733_v41  ;;  %v680_v61 = vmul.f32 %v1393_v45, %v676_v59 }
 0x37c   : > { %718 = vperm.xlu1 %1377, %v1389_v42  }
 0x385   : > { %713 = vperm.xlu0 %1376, %v1391_v43  }
 0x3a0   : > { %688 = vadd.xlane.f32.xlu1 %v687_v14 }
 0x3a4   : > { %691 = vadd.xlane.f32.xlu1 %v690_v44 }
 0x3b5   : > { %723 = vperm.xlu1 %1377, %v1393_v45  }
 0x3f8   : > { %v683_v49 = vpop.xlane.xlu1 %682 }
 0x3f9   : > { %v693_v51 = vadd.f32 %v683_v49, %v677_v48 }
 0x3fb   : > { %698 = vst.msk [vmem:[#allocation3] sm:$0xff] %vm371_vm0, %v693_v51 }
 0x3fc   : > { %v686_v53 = vpop.xlane.xlu0 %685  ;;  %v719_v55 = vpop.permute.xlu1 %718 }
 0x3fd   : > { %v694_v54 = vadd.f32 %v686_v53, %v678_v52  ;;  %v728_v17 = vmul.f32 %v719_v55, %v704_v11 }
 0x3ff   : > { %699 = vst.msk [vmem:[#allocation3 + $0x8] sm:$0xff] %vm371_vm0, %v694_v54 }
 0x404   : > { %v714_v4 = vpop.permute.xlu0 %713 }
 0x405   : > { %v727_v9 = vmul.f32 %v714_v4, %v703_v3 }
 0x42d   : > { %v689_v58 = vpop.xlane.xlu1 %688 }
 0x42e   : > { %v695_v60 = vadd.f32 %v689_v58, %v679_v57 }
 0x430   : > { %700 = vst.msk [vmem:[#allocation3 + $0x10] sm:$0xff] %vm371_vm0, %v695_v60 }
 0x431   : > { %v692_v62 = vpop.xlane.xlu1 %691 }
 0x432   : > { %v696_v63 = vadd.f32 %v692_v62, %v680_v61 }
 0x434   : > { %701 = vst.msk [vmem:[#allocation3 + $0x18] sm:$0xff] %vm371_vm0, %v696_v63 }
 0x435   : > { %v724_v20 = vpop.permute.xlu1 %723 }
 0x436   : > { %v729_v25 = vmul.f32 %v724_v20, %v705_v19 }
 0x43f   : > { %v775_v5 = vpop.f32.mrb[8].mxu0 }
 0x440   : > { %v919_v6 = vadd.f32 %v775_v5, %v726_v1  ;;  %v1266_v7 = vpop.f32.mrb[9].mxu0 }
 0x441   : > { %v778_v8 = vpop.f32.mrb[10].mxu0 }
 0x442   : > { %923 = vst.msk [vmem:[#allocation4] sm:$0xff] %vm380_vm1, %v919_v6  ;;  %v1267_v10 = vpop.f32.mrb[11].mxu0 }
 0x443   : > { %v821_v12 = vpop.f32.mrb[8].mxu1 }
 0x444   : > { %v920_v13 = vadd.f32 %v821_v12, %v727_v9  ;;  %v1272_v15 = vpop.f32.mrb[9].mxu1 }
 0x445   : > { %v824_v16 = vpop.f32.mrb[10].mxu1 }
 0x446   : > { %924 = vst.msk [vmem:[#allocation4 + $0x8] sm:$0xff] %vm380_vm1, %v920_v13  ;;  %v1273_v18 = vpop.f32.mrb[11].mxu1 }
 0x447   : > { %v867_v21 = vpop.f32.mrb[12].mxu0 }
 0x448   : > { %v921_v22 = vadd.f32 %v867_v21, %v728_v17  ;;  %v1278_v23 = vpop.f32.mrb[13].mxu0 }
 0x449   : > { %v870_v24 = vpop.f32.mrb[14].mxu0 }
 0x44a   : > { %925 = vst.msk [vmem:[#allocation4 + $0x10] sm:$0xff] %vm380_vm1, %v921_v22  ;;  %v1279_v26 = vpop.f32.mrb[15].mxu0 }
 0x44b   : > { %v913_v27 = vpop.f32.mrb[12].mxu1 }
 0x44c   : > { %v922_v28 = vadd.f32 %v913_v27, %v729_v25  ;;  %v1284_v29 = vpop.f32.mrb[13].mxu1 }
 0x44d   : > { %v916_v30 = vpop.f32.mrb[14].mxu1 }
 0x44e   : > { %926 = vst.msk [vmem:[#allocation4 + $0x18] sm:$0xff] %vm380_vm1, %v922_v28  ;;  %v1285_v31 = vpop.f32.mrb[15].mxu1 }
 0x44f PF: > { %v935_v32 = vld [vmem:[#allocation3 + $0x8] sm:$0xff]  ;;  %v937_v33 = vld [vmem:[#allocation3 + $0x18] sm:$0xff]  ;;  %v936_v34 = vld [vmem:[#allocation3 + $0x10] sm:$0xff]  ;;  %v1627_v35 = vmov 0   ;;  %s1628_s22 = smov 8   ;;  %vm982_vm9 = vcmask 60416  }
 0x450   : > { %1394 = vset.pattern.permute.xlu0 %v1627_v35  ;;  %1395 = vset.pattern.permute.xlu1 %v1627_v35  ;;  %1396 = vrcp.f32 %v935_v32  ;;  %v934_v36 = vld [vmem:[#allocation3] sm:$0xff]  ;;  %vm939_vm5 = vcmp.gt.f32.partialorder %v935_v32, 0.0  ;;  %vm941_vm6 = vcmp.gt.f32.partialorder %v937_v33, 0.0  ;;  %vm940_vm7 = vcmp.gt.f32.partialorder %v936_v34, 0.0  ;;  %v951_v44 = vld [vmem:[#allocation4 + $0x8] sm:$0xff]  ;;  %s1629_s24 = smov 16  }
 0x451   : > { %1398 = vrcp.f32 %v937_v33  ;;  %vm938_vm8 = vcmp.gt.f32.partialorder %v934_v36, 0.0  ;;  %v952_v49 = vld [vmem:[#allocation4 + $0x10] sm:$0xff]  ;;  %v950_v51 = vld [vmem:[#allocation4] sm:$0xff]  ;;  %s1630_s17 = smov 24   ;;  %vm990_vm10 = vcmask 126016   ;;  %s1213_s29 = sshll.u32 %s1606_s18, 6 }
 0x452   : > { %1400 = vrcp.f32 %v936_v34  ;;  %s1023_s14 = sshll.u32 %s1939_s1, 4  ;;  %vm998_vm11 = vcmask 191616   ;;  %vm1006_vm12 = vcmask 257216   ;;  %s2076_s6 = scalar_lea.hbm %s2131_s4, %s1213_s29  ;;  %s2078_s14 = int_to_ptr.vmem [resolvable:$true] %s1023_s14 }
 0x453   : > { %1402 = vrcp.f32 %v934_v36  ;;  %s1009_s11 = scalar_lea.sflag [#allocation7], %s1893_s25  ;;  %s1524_s0 = scalar_lea.vmem %s2078_s14, 64 }
 0x454   : > { %p1525_p1 = scmp.ne.s32.totalorder %s2078_s14, %s1524_s0  ;;  %p2167_p6 = scmp.ne.s32.totalorder %s2151_s28, 0 }
 0x455   : > { %v953_v2 = vld [vmem:[#allocation4 + $0x18] sm:$0xff]  ;;  %s1631_s18 = smov [#allocation13]  }
 0x456   : > { %p1526_p13 = pnand %p1525_p1, %p2167_p6  ;;  %s1528_s10 = sshll.u32 %s1631_s18, 4  ;;  %s1529_s10 = int_to_ptr.vmem [resolvable:$false] %s1528_s10 }
 0x457   : > { %s1530_s30 = scalar_lea.vmem %s1529_s10, 128  ;;  %p1531_p2 = scmp.lt.s32.totalorder %s2078_s14, %s1529_s10 }
 0x458   : > { %p1527_p11 = pneg %p1526_p13  ;;  %p1532_p5 = scmp.lt.s32.totalorder %s1530_s30, %s1524_s0 }
 0x45a   : > { %v1397_v37 = vpop.eup %1396  ;;  %p1533_p7 = por %p1532_p5, %p1531_p2 }
 0x45b   : > { %v1399_v38 = vpop.eup %1398  ;;  %v947_v39 = vsel %vm939_vm5, %v1397_v37, 0.0 }
 0x45c   : > { %v1401_v40 = vpop.eup %1400  ;;  %961 = vperm.xlu0 %1394, %v947_v39   ;;  %v949_v41 = vsel %vm941_vm6, %v1399_v38, 0.0  ;;  %p1534_p3 = pnand %p1533_p7, %p1527_p11 }
 0x45d   : > { %v1403_v42 = vpop.eup %1402  ;;  %971 = vperm.xlu1 %1395, %v949_v41   ;;  %v948_v43 = vsel %vm940_vm7, %v1401_v40, 0.0 }
 0x45e   : > { %v946_v14 = vsel %vm938_vm8, %v1403_v42, 0.0 }
 0x460   : > { %966 = vperm.xlu0 %1394, %v948_v43  }
 0x461   : > { %956 = vperm.xlu1 %1395, %v946_v14  }
 0x4db   : > { %v962_v45 = vpop.permute.xlu0 %961 }
 0x4dc   : > { %v975_v46 = vmul.f32 %v962_v45, %v951_v44  ;;  %v972_v47 = vpop.permute.xlu1 %971 }
 0x4dd   : > { %v977_v48 = vmul.f32 %v972_v47, %v953_v2 }
 0x4de   : > { %v1219_v50 = vpack.c.bf16 %v975_v46, %v975_v46 }
 0x4df   : > { %v967_v52 = vpop.permute.xlu0 %966  ;;  %v1221_v53 = vpack.c.bf16 %v977_v48, %v977_v48 }
 0x4e0   : > { %v976_v54 = vmul.f32 %v967_v52, %v952_v49  ;;  %987 = vrot.lane.b32.xlu0 %v1219_v50, %s1628_s22  ;;  %v957_v55 = vpop.permute.xlu1 %956 }
 0x4e1   : > { %v974_v56 = vmul.f32 %v957_v55, %v950_v51 }
 0x4e2   : > { %v1220_v57 = vpack.c.bf16 %v976_v54, %v976_v54 }
 0x4e3   : > { %v978_v58 = vpack.c.bf16 %v974_v56, %v974_v56 }
 0x4e4   : > { %995 = vrot.lane.b32.xlu1 %v1220_v57, %s1629_s24  ;;  %1003 = vrot.lane.b32.xlu0 %v1221_v53, %s1630_s17 }
 0x4e5   : > { %983 = vst.msk [vmem:[%s1939_s1] sm:$0xf] %vm982_vm9, %v978_v58 }
 0x552   : > { %v988_v59 = vpop.permute.xlu0 %987 }
 0x553   : > { %991 = vst.msk [vmem:[%s1939_s1] sm:$0xf] %vm990_vm10, %v988_v59 }
 0x556   : > { %v996_v60 = vpop.permute.xlu1 %995  ;;  %v1004_v61 = vpop.permute.xlu0 %1003 }
 0x557   : > { %999 = vst.msk [vmem:[%s1939_s1] sm:$0xf] %vm998_vm11, %v996_v60 }
 0x558   : > { %1007 = vst.msk [vmem:[%s1939_s1] sm:$0xf] %vm1006_vm12, %v1004_v61 }
 0x559   : > { %1537 = shalt.err (!%p1534_p3)
}
 0x55a   : > { %s1538_s25 = scalar_lea.hbm %s2076_s6, 64  ;;  %s1542_s26 = scalar_lea.hbm %s2131_s4, 128 }
 0x55b   : > { %p1539_p10 = scmp.ne.s32.totalorder %s2076_s6, %s1538_s25  ;;  %p1543_p8 = scmp.lt.u32.totalorder %s2076_s6, %s2131_s4 }
 0x55c   : > { %p1544_p4 = scmp.lt.u32.totalorder %s1542_s26, %s1538_s25  ;;  %p1546_p1 = scmp.lt.u32.totalorder %s1538_s25, %s2076_s6 }
 0x55d   : > { %p1540_p9 = pnand %p1539_p10, %p2167_p6 }
 0x55e   : > { %p1545_p0 = por %p1544_p4, %p1543_p8 }
 0x55f   : > { %p1541_p12 = pneg %p1540_p9 }
 0x560   : > { %p1547_p13 = por %p1546_p1, %p1545_p0 }
 0x562   : > { %p1548_p11 = pnand %p1547_p13, %p1541_p12 }
 0x564   : > { %1551 = shalt.err (!%p1548_p11)
}
 0x565   : > { %1296 = dma.vmem_to_hbm [thread:$0]  (%p2167_p6), %s2078_s14, 64, %s2076_s6, %s1009_s11  }
 0x566 PF: > { %s2168_s12 = sld [smem:[#allocation22_spill]]  ;;  %s2169_s20 = sld [smem:[#allocation19_spill]] }
 0x567   : > { %s1035_s21 = sand.u32 1, %s1594_s15  }
 0x568   : > { %s1036_s27 = scalar_lea.sflag [#allocation7], %s1035_s21 }
 0x56c   : > { %p2170_p2 = scmp.ne.s32.totalorder %s2168_s12, 0  ;;  %p2171_p5 = scmp.ge.s32.totalorder %s2169_s20, 2 }
 0x56e   : > { %p1312_p7 = pnand %p2171_p5, %p2170_p2 }
 0x570   : > { %1589 = dma.done.wait (!%p1312_p7), %s1036_s27, 64  }
 0x571   : > { %1591 = vsyncadd (!%p1312_p7), %s1036_s27, 4294967232  ;;  %s26_s20 = sadd.s32 1, %s2169_s20   ;;  %s2172_s1 = sld [smem:[#allocation18_spill]] }
 0x572   : > { %p23_p3 = scmp.ge.s32.totalorder %s26_s20, 4   ;;  %s2173_s17 = sld [smem:[#allocation21_spill]] }
 0x573   : > { %s2174_s28 = sld [smem:[#allocation20_spill]]  ;;  %s2175_s15 = smov %s1598_s16 }
 0x574   : > { %s2177_s18 = smov %s1610_s19  ;;  %25 = sbr.rel (!%p23_p3) target bundleno = 13 (0xd), region = 130 }
 0x577   : > { %s2176_s16 = smov %s2172_s1 }
 0x579   : > { %s2178_s19 = smov %s2174_s28 }
 0x57b   :  { %1041 = vsyncpa [#allocation6], 1 }
 0x57c   :  { %1043 = vsyncpa [#allocation6 + $0x1], 1 }
 0x57d   :  { %1044 = vsyncpa [#allocation9], 1 }
 0x57e   :  { %1046 = vsyncpa [#allocation9 + $0x1], 1 }
 0x57f   :  { %1047 = vsyncpa [#allocation12], 1 }
 0x580   :  { %1049 = vsyncpa [#allocation12 + $0x1], 1 }
 0x581   :  { %1050 = vsyncpa [#allocation7], 1 }
 0x582   :  { %1052 = vsyncpa [#allocation7 + $0x1], 1 }

</bundles_post_ra>
